<compile_context>
chip_gen: v7x
topology: tpu7x:2x2x1
jax: 0.10.0
libtpu: 0.0.40
codegen_flags: <defaults>
</compile_context>

<pallas_src>
import functools
import math

import jax
import jax.numpy as jnp
from jax import lax
from jax.experimental import pallas as pl
from jax.experimental.pallas import tpu as pltpu


# Scoped VMEM limit: above the 16/32 MiB defaults, below physical on all gens
# (v5e/v6e: 128 MiB, v7x: 64 MiB), with headroom for compiler scratch.
_VMEM_LIMIT = 48 * 1024 * 1024


# ----------------------------------------------------------------------------
# Fused DecoderBlock kernel (self-attention + LN + FFN + LN), one batch element
# per grid step.
# ----------------------------------------------------------------------------
def _decoder_block_kernel(x_ref, wqkv_ref, wo_ref, ln1_w_ref, ln1_b_ref,
                          w1_ref, w2_ref, ln2_w_ref, ln2_b_ref, out_ref,
                          *, heads, d_key, eps):
    x_bf = x_ref[0]                                        # (S, D) bf16
    x = x_bf.astype(jnp.float32)                           # f32 copy for residual
    S, D = x.shape
    scale = 1.0 / math.sqrt(d_key)

    # Fused Q/K/V projection: one wide matmul, N = 3*D (all heads packed).
    qkv = jnp.dot(x_bf, wqkv_ref[...],
                  preferred_element_type=jnp.float32)      # (S, 3D) f32

    # Fold the 1/sqrt(d_key) scale into q, then drop to bf16 for the MXU.
    q = (qkv[:, :D] * scale).astype(jnp.bfloat16)
    k = qkv[:, D:2 * D].astype(jnp.bfloat16)
    v = qkv[:, 2 * D:].astype(jnp.bfloat16)

    # Causal mask built in-kernel from iotas (no mask DMA).
    row = lax.broadcasted_iota(jnp.int32, (S, S), 0)
    col = lax.broadcasted_iota(jnp.int32, (S, S), 1)
    causal = row >= col

    # Per-head attention.  Head outputs are collected into one (S, D) buffer so
    # Wo is a SINGLE K=D matmul after the loop (instead of `heads` K=d_key
    # matmuls + per-head Wo sublane slices + per-head (S,D) adds).
    # TODO(synk): group heads into a batched dot_general (head batch dim) to
    # raise MXU contraction depth when `heads` is large.
    o_heads = []
    for h in range(heads):
        lo = h * d_key
        hi = lo + d_key
        q_h = q[:, lo:hi]
        k_h = k[:, lo:hi]
        v_h = v[:, lo:hi]

        # scores = q_h @ k_h^T without materializing a transpose.
        scores = lax.dot_general(q_h, k_h, (((1,), (1,)), ((), ())),
                                 preferred_element_type=jnp.float32)   # (S, S)
        scores = jnp.where(causal, scores, -1e30)

        m = jnp.max(scores, axis=-1, keepdims=True)
        p = jnp.exp(scores - m)                                        # <= 1
        denom = jnp.sum(p, axis=-1, keepdims=True)                     # f32

        # Normalize AFTER the PV matmul: S*d_key multiplies, not S*S.
        o_h = jnp.dot(p.astype(jnp.bfloat16), v_h,
                      preferred_element_type=jnp.float32)              # (S, dk)
        o_heads.append(o_h * pl.reciprocal(denom, approx=True))

    o_cat = jnp.concatenate(o_heads, axis=-1).astype(jnp.bfloat16)     # (S, D)
    attn_out = jnp.dot(o_cat, wo_ref[...],
                       preferred_element_type=jnp.float32)             # (S, D)

    # Residual + LayerNorm 1 (single-pass mean / E[x^2] variance, f32).
    a1 = x + attn_out
    mu1 = jnp.mean(a1, axis=-1, keepdims=True)
    var1 = jnp.mean(a1 * a1, axis=-1, keepdims=True) - mu1 * mu1
    a1n = (a1 - mu1) * lax.rsqrt(var1 + eps)
    a1n = a1n * ln1_w_ref[...] + ln1_b_ref[...]

    # FFN: relu(a1n @ W1) @ W2, bf16 MXU inputs, f32 accumulation.
    hdn = jnp.dot(a1n.astype(jnp.bfloat16), w1_ref[...],
                  preferred_element_type=jnp.float32)
    hdn = jnp.maximum(hdn, 0.0)
    ffn = jnp.dot(hdn.astype(jnp.bfloat16), w2_ref[...],
                  preferred_element_type=jnp.float32)

    # Residual + LayerNorm 2 (dropout is identity in eval mode).
    a2 = a1n + ffn
    mu2 = jnp.mean(a2, axis=-1, keepdims=True)
    var2 = jnp.mean(a2 * a2, axis=-1, keepdims=True) - mu2 * mu2
    a2n = (a2 - mu2) * lax.rsqrt(var2 + eps)
    out_ref[0] = (a2n * ln2_w_ref[...] + ln2_b_ref[...]).astype(out_ref.dtype)


def _decoder_block_pallas(x, layer, *, heads, d_key, eps, weight_buffering):
    B, S, D = x.shape
    d_ff = layer["w1"].shape[1]

    kernel = functools.partial(_decoder_block_kernel,
                               heads=heads, d_key=d_key, eps=eps)

    def resident(shape, single_buffer):
        # Constant block index -> weight stays resident in VMEM across batch
        # steps.  Large matmul weights are single-buffered (they never change,
        # so the second pipeline buffer is pure VMEM waste).
        index_map = lambda b: (0,) * len(shape)
        if single_buffer and weight_buffering is not None:
            return pl.BlockSpec(shape, index_map, pipeline_mode=weight_buffering)
        return pl.BlockSpec(shape, index_map)

    return pl.pallas_call(
        kernel,
        out_shape=jax.ShapeDtypeStruct((B, S, D), jnp.bfloat16),
        grid_spec=pltpu.PrefetchScalarGridSpec(
            num_scalar_prefetch=0,
            grid=(B,),
            in_specs=[
                pl.BlockSpec((1, S, D), lambda b: (b, 0, 0)),   # x (bf16)
                resident((D, 3 * D), True),                     # fused Wqkv^T (bf16)
                resident((D, D), True),                         # Wo^T (bf16)
                resident((1, D), False),                        # ln1 weight
                resident((1, D), False),                        # ln1 bias
                resident((D, d_ff), True),                      # W1^T (bf16)
                resident((d_ff, D), True),                      # W2^T (bf16)
                resident((1, D), False),                        # ln2 weight
                resident((1, D), False),                        # ln2 bias
            ],
            out_specs=pl.BlockSpec((1, S, D), lambda b: (b, 0, 0)),
        ),
        compiler_params=pltpu.CompilerParams(
            dimension_semantics=("parallel",),
            vmem_limit_bytes=_VMEM_LIMIT),
    )(x, layer["wqkv"], layer["wo"], layer["ln1_w"], layer["ln1_b"],
      layer["w1"], layer["w2"], layer["ln2_w"], layer["ln2_b"])


_WEIGHT_SINGLE_BUFFER_OK = hasattr(pl, "Buffered")


def decoder_block(x, layer, *, heads, d_key, eps=1e-5):
    """x: [B, S, d_model] bf16; layer: dict of block weights (bf16 matmul, f32 LN)."""
    global _WEIGHT_SINGLE_BUFFER_OK
    if _WEIGHT_SINGLE_BUFFER_OK:
        try:
            return _decoder_block_pallas(x, layer, heads=heads, d_key=d_key,
                                         eps=eps, weight_buffering=pl.Buffered(1))
        except Exception:
            # pipeline_mode=Buffered(1) unsupported on this build/backend;
            # fall back to default double-buffered weights.
            _WEIGHT_SINGLE_BUFFER_OK = False
    return _decoder_block_pallas(x, layer, heads=heads, d_key=d_key,
                                 eps=eps, weight_buffering=None)


# ----------------------------------------------------------------------------
# Final vocab projection kernel, tiled over (batch, vocab-column tiles) so the
# weight block (D, tn) and the f32 output block (1, S, tn) stay VMEM-bounded at
# realistic vocab sizes; tn is a multiple of 128 -> lane-dense unmasked stores.
# ----------------------------------------------------------------------------
def _logits_kernel(x_ref, w_ref, out_ref):
    out_ref[0] = jnp.dot(x_ref[0], w_ref[...],
                         preferred_element_type=jnp.float32)


def vocab_projection(x, w_out, *, v_tile=2048):
    B, S, D = x.shape
    V = w_out.shape[1]
    tn = min(V, v_tile)
    assert V % tn == 0 and tn % 128 == 0, (V, tn)
    return pl.pallas_call(
        _logits_kernel,
        out_shape=jax.ShapeDtypeStruct((B, S, V), jnp.float32),
        grid_spec=pltpu.PrefetchScalarGridSpec(
            num_scalar_prefetch=0,
            grid=(B, V // tn),
            in_specs=[pl.BlockSpec((1, S, D), lambda b, j: (b, 0, 0)),
                      pl.BlockSpec((D, tn), lambda b, j: (0, j))],
            out_specs=pl.BlockSpec((1, S, tn), lambda b, j: (b, 0, j)),
        ),
        compiler_params=pltpu.CompilerParams(
            dimension_semantics=("parallel", "arbitrary"),
            vmem_limit_bytes=_VMEM_LIMIT),
    )(x, w_out)


# ----------------------------------------------------------------------------
# Full Transformer forward (eval mode, save_activations=False)
# ----------------------------------------------------------------------------
def transformer_forward(tokens, params, *, heads, d_key):
    # TODO(synk): embedding gather + positional-encoding add stay in XLA; the
    # dynamic row gather has no clean dense-BlockSpec Pallas expression here.
    S = tokens.shape[-1]
    x = (params["embedding"][tokens] + params["pe"][:S]).astype(jnp.bfloat16)
    for layer in params["layers"]:
        x = decoder_block(x, layer, heads=heads, d_key=d_key)
    logits = vocab_projection(x, params["w_out"])
    # save_activations=False -> empty attention / value activation lists.
    return logits, [], []


# ----------------------------------------------------------------------------
# Pure-JAX reference mirroring the same bf16-matmul / f32-accumulate math
# (including bf16 inter-layer carries and normalize-after-PV), so the
# tolerance check validates the Pallas implementation, not precision drift.
# ----------------------------------------------------------------------------
def _ref_layernorm(x, w, b, eps):
    mu = jnp.mean(x, axis=-1, keepdims=True)
    var = jnp.mean(x * x, axis=-1, keepdims=True) - mu * mu
    return (x - mu) * lax.rsqrt(var + eps) * w + b


def _ref_block(x_bf, layer, heads, d_key, eps=1e-5):
    B, S, D = x_bf.shape
    scale = 1.0 / math.sqrt(d_key)
    x = x_bf.astype(jnp.float32)
    qkv = jnp.dot(x_bf, layer["wqkv"], preferred_element_type=jnp.float32)
    q = (qkv[..., :D] * scale).astype(jnp.bfloat16)
    k = qkv[..., D:2 * D].astype(jnp.bfloat16)
    v = qkv[..., 2 * D:].astype(jnp.bfloat16)
    causal = jnp.tril(jnp.ones((S, S), dtype=bool))

    o_heads = []
    for h in range(heads):
        lo, hi = h * d_key, (h + 1) * d_key
        scores = jnp.einsum("bqd,bkd->bqk", q[..., lo:hi], k[..., lo:hi],
                            preferred_element_type=jnp.float32)
        scores = jnp.where(causal, scores, -1e30)
        m = jnp.max(scores, axis=-1, keepdims=True)
        p = jnp.exp(scores - m)
        denom = jnp.sum(p, axis=-1, keepdims=True)
        o_h = jnp.einsum("bqk,bkd->bqd", p.astype(jnp.bfloat16), v[..., lo:hi],
                         preferred_element_type=jnp.float32)
        o_heads.append(o_h / denom)
    o_cat = jnp.concatenate(o_heads, axis=-1).astype(jnp.bfloat16)
    attn_out = jnp.dot(o_cat, layer["wo"], preferred_element_type=jnp.float32)

    a1 = _ref_layernorm(x + attn_out, layer["ln1_w"], layer["ln1_b"], eps)
    hdn = jnp.maximum(jnp.dot(a1.astype(jnp.bfloat16), layer["w1"],
                              preferred_element_type=jnp.float32), 0.0)
    ffn = jnp.dot(hdn.astype(jnp.bfloat16), layer["w2"],
                  preferred_element_type=jnp.float32)
    a2 = _ref_layernorm(a1 + ffn, layer["ln2_w"], layer["ln2_b"], eps)
    return a2.astype(jnp.bfloat16)


def ref_forward(tokens, params, heads, d_key):
    S = tokens.shape[-1]
    x = (params["embedding"][tokens] + params["pe"][:S]).astype(jnp.bfloat16)
    for layer in params["layers"]:
        x = _ref_block(x, layer, heads, d_key)
    return jnp.dot(x, params["w_out"], preferred_element_type=jnp.float32)


# ----------------------------------------------------------------------------
# Parameter construction (matches the PyTorch module's layout; weights are
# stored pre-transposed so kernels compute x @ W == F.linear(x, W^T)).
# ----------------------------------------------------------------------------
def position_encoding(context_len, d_model):
    pos = jnp.arange(context_len, dtype=jnp.float32)[:, None]
    i = jnp.arange(d_model, dtype=jnp.float32)[None, :]
    even_i = jnp.floor(i / 2.0) * 2.0  # i for even columns, i-1 for odd
    angle = pos / jnp.power(10000.0, even_i / d_model)
    return jnp.where(i % 2 == 0, jnp.sin(angle), jnp.cos(angle))


def init_params(key, *, vocab, d_model, n_layers, max_context):
    d_ff = 4 * d_model
    n_per_layer = 10
    keys = jax.random.split(key, 2 + n_layers * n_per_layer)
    emb_key, out_key = keys[0], keys[1]

    def uniform(k, shape, fan_in):
        bound = 1.0 / math.sqrt(fan_in)
        return jax.random.uniform(k, shape, jnp.float32, -bound, bound)

    layers = []
    for l in range(n_layers):
        lk = keys[2 + l * n_per_layer: 2 + (l + 1) * n_per_layer]
        wq = uniform(lk[0], (d_model, d_model), d_model)
        wk = uniform(lk[1], (d_model, d_model), d_model)
        wv = uniform(lk[2], (d_model, d_model), d_model)
        layers.append({
            # fused [Wq^T | Wk^T | Wv^T], heads packed along columns, bf16
            "wqkv": jnp.concatenate([wq, wk, wv], axis=1).astype(jnp.bfloat16),
            "wo": uniform(lk[3], (d_model, d_model), d_model).astype(jnp.bfloat16),
            "w1": uniform(lk[4], (d_model, d_ff), d_model).astype(jnp.bfloat16),
            "w2": uniform(lk[5], (d_ff, d_model), d_ff).astype(jnp.bfloat16),
            "ln1_w": (1.0 + 0.1 * jax.random.normal(lk[6], (1, d_model))).astype(jnp.float32),
            "ln1_b": (0.1 * jax.random.normal(lk[7], (1, d_model))).astype(jnp.float32),
            "ln2_w": (1.0 + 0.1 * jax.random.normal(lk[8], (1, d_model))).astype(jnp.float32),
            "ln2_b": (0.1 * jax.random.normal(lk[9], (1, d_model))).astype(jnp.float32),
        })

    return {
        "embedding": jax.random.normal(emb_key, (vocab, d_model), jnp.float32),
        "pe": position_encoding(max_context, d_model),
        "layers": layers,
        "w_out": uniform(out_key, (d_model, vocab), d_model).astype(jnp.bfloat16),
    }


if __name__ == "__main__":
    # Small shapes consistent with the module (scaled down from the defaults).
    B, S = 2, 8
    n_layers, n_heads, d_model, vocab = 2, 4, 32, 128
    max_context = 16
    d_key = d_model // n_heads

    root = jax.random.PRNGKey(0)
    k_tok, k_par = jax.random.split(root)
    tokens = jax.random.randint(k_tok, (B, S), 0, vocab, dtype=jnp.int32)
    params = init_params(k_par, vocab=vocab, d_model=d_model,
                         n_layers=n_layers, max_context=max_context)

    logits, attns, vals = transformer_forward(tokens, params,
                                              heads=n_heads, d_key=d_key)
    jax.block_until_ready(logits)

    ref = ref_forward(tokens, params, n_heads, d_key)
    assert logits.shape == (B, S, vocab)
    max_err = float(jnp.max(jnp.abs(logits - ref)))
    assert jnp.allclose(logits, ref, atol=2e-2, rtol=2e-2), max_err

    print("KERNEL_OK")
</pallas_src>

<mosaic_0001>
module attributes {stable_mosaic.version = 11 : i64} {
  func.func @_decoder_block_kernel(%arg0: i32, %arg1: memref<1x8x32xbf16, #tpu.memory_space<vmem>>, %arg2: memref<32x96xbf16, #tpu.memory_space<vmem>>, %arg3: memref<32x32xbf16, #tpu.memory_space<vmem>>, %arg4: memref<1x32xf32, #tpu.memory_space<vmem>>, %arg5: memref<1x32xf32, #tpu.memory_space<vmem>>, %arg6: memref<32x128xbf16, #tpu.memory_space<vmem>>, %arg7: memref<128x32xbf16, #tpu.memory_space<vmem>>, %arg8: memref<1x32xf32, #tpu.memory_space<vmem>>, %arg9: memref<1x32xf32, #tpu.memory_space<vmem>>, %arg10: memref<1x8x32xbf16, #tpu.memory_space<vmem>>) attributes {dimension_semantics = [#tpu.dimension_semantics<parallel>], iteration_bounds = array<i64: 2>, scalar_prefetch = 0 : i64, scratch_operands = 0 : i64, tpu.core_type = #tpu.core_type<tc>, window_params = [{transform_indices = @transform_0, window_bounds = array<i64: 1, 8, 32>}, {pipeline_mode = #tpu.pipeline_mode<synchronous>, transform_indices = @transform_1, window_bounds = array<i64: 32, 96>}, {pipeline_mode = #tpu.pipeline_mode<synchronous>, transform_indices = @transform_2, window_bounds = array<i64: 32, 32>}, {pipeline_mode = #tpu.pipeline_mode<synchronous>, transform_indices = @transform_3, window_bounds = array<i64: 1, 32>}, {pipeline_mode = #tpu.pipeline_mode<synchronous>, transform_indices = @transform_4, window_bounds = array<i64: 1, 32>}, {pipeline_mode = #tpu.pipeline_mode<synchronous>, transform_indices = @transform_5, window_bounds = array<i64: 32, 128>}, {pipeline_mode = #tpu.pipeline_mode<synchronous>, transform_indices = @transform_6, window_bounds = array<i64: 128, 32>}, {pipeline_mode = #tpu.pipeline_mode<synchronous>, transform_indices = @transform_7, window_bounds = array<i64: 1, 32>}, {pipeline_mode = #tpu.pipeline_mode<synchronous>, transform_indices = @transform_8, window_bounds = array<i64: 1, 32>}, {transform_indices = @transform_9, window_bounds = array<i64: 1, 8, 32>}]} {
    %c0 = arith.constant 0 : index
    %c0_0 = arith.constant 0 : index
    %c0_1 = arith.constant 0 : index
    %0 = vector.load %arg1[%c0, %c0_0, %c0_1] : memref<1x8x32xbf16, #tpu.memory_space<vmem>>, vector<1x8x32xbf16>
    %1 = vector.shape_cast %0 : vector<1x8x32xbf16> to vector<8x32xbf16>
    %2 = arith.extf %1 : vector<8x32xbf16> to vector<8x32xf32>
    %c0_2 = arith.constant 0 : index
    %c0_3 = arith.constant 0 : index
    %3 = vector.load %arg2[%c0_2, %c0_3] : memref<32x96xbf16, #tpu.memory_space<vmem>>, vector<32x96xbf16>
    %cst = arith.constant dense<0.000000e+00> : vector<8x96xf32>
    %4 = tpu.matmul %1, %3, %cst {dimension_numbers = #tpu.dot_dimension_numbers<[1], [0], [0], [1], [0, 0, 1, 1], [], []>} : vector<8x32xbf16>, vector<32x96xbf16>, vector<8x96xf32> -> vector<8x96xf32>
    %5 = vector.extract_strided_slice %4 {offsets = [0, 0], sizes = [8, 32], strides = [1, 1]} : vector<8x96xf32> to vector<8x32xf32>
    %cst_4 = arith.constant 0.353553385 : f32
    %6 = vector.broadcast %cst_4 : f32 to vector<8x32xf32>
    %7 = arith.mulf %5, %6 : vector<8x32xf32>
    %8 = arith.truncf %7 : vector<8x32xf32> to vector<8x32xbf16>
    %9 = vector.extract_strided_slice %4 {offsets = [0, 32], sizes = [8, 32], strides = [1, 1]} : vector<8x96xf32> to vector<8x32xf32>
    %10 = arith.truncf %9 : vector<8x32xf32> to vector<8x32xbf16>
    %11 = vector.extract_strided_slice %4 {offsets = [0, 64], sizes = [8, 32], strides = [1, 1]} : vector<8x96xf32> to vector<8x32xf32>
    %12 = arith.truncf %11 : vector<8x32xf32> to vector<8x32xbf16>
    %13 = tpu.iota {dimensions = array<i32: 0>} : vector<8x8xi32>
    %14 = tpu.iota {dimensions = array<i32: 1>} : vector<8x8xi32>
    %15 = arith.cmpi sge, %13, %14 : vector<8x8xi32>
    %16 = vector.extract_strided_slice %8 {offsets = [0, 0], sizes = [8, 8], strides = [1, 1]} : vector<8x32xbf16> to vector<8x8xbf16>
    %17 = vector.extract_strided_slice %10 {offsets = [0, 0], sizes = [8, 8], strides = [1, 1]} : vector<8x32xbf16> to vector<8x8xbf16>
    %18 = vector.extract_strided_slice %12 {offsets = [0, 0], sizes = [8, 8], strides = [1, 1]} : vector<8x32xbf16> to vector<8x8xbf16>
    %cst_5 = arith.constant dense<0.000000e+00> : vector<8x8xf32>
    %19 = tpu.matmul %16, %17, %cst_5 {dimension_numbers = #tpu.dot_dimension_numbers<[1], [1], [0], [0], [0, 0, 1, 0], [], []>} : vector<8x8xbf16>, vector<8x8xbf16>, vector<8x8xf32> -> vector<8x8xf32>
    %cst_6 = arith.constant -1.000000e+30 : f32
    %20 = vector.broadcast %cst_6 : f32 to vector<8x8xf32>
    %21 = arith.select %15, %19, %20 : vector<8x8xi1>, vector<8x8xf32>
    %cst_7 = arith.constant dense<0xFF800000> : vector<8xf32>
    %22 = vector.multi_reduction <maximumf>, %21, %cst_7 [1] : vector<8x8xf32> to vector<8xf32>
    %23 = vector.shape_cast %22 : vector<8xf32> to vector<8x1xf32>
    %24 = vector.broadcast %23 : vector<8x1xf32> to vector<8x8xf32>
    %25 = arith.subf %21, %24 : vector<8x8xf32>
    %26 = math.exp %25 : vector<8x8xf32>
    %cst_8 = arith.constant dense<0.000000e+00> : vector<8xf32>
    %27 = vector.multi_reduction <add>, %26, %cst_8 [1] : vector<8x8xf32> to vector<8xf32>
    %28 = vector.shape_cast %27 : vector<8xf32> to vector<8x1xf32>
    %29 = arith.truncf %26 : vector<8x8xf32> to vector<8x8xbf16>
    %cst_9 = arith.constant dense<0.000000e+00> : vector<8x8xf32>
    %30 = tpu.matmul %29, %18, %cst_9 {dimension_numbers = #tpu.dot_dimension_numbers<[1], [0], [0], [1], [0, 0, 1, 1], [], []>} : vector<8x8xbf16>, vector<8x8xbf16>, vector<8x8xf32> -> vector<8x8xf32>
    %31 = tpu.reciprocal %28 {approx = true} : vector<8x1xf32> -> vector<8x1xf32>
    %32 = vector.broadcast %31 : vector<8x1xf32> to vector<8x8xf32>
    %33 = arith.mulf %30, %32 : vector<8x8xf32>
    %34 = vector.extract_strided_slice %8 {offsets = [0, 8], sizes = [8, 8], strides = [1, 1]} : vector<8x32xbf16> to vector<8x8xbf16>
    %35 = vector.extract_strided_slice %10 {offsets = [0, 8], sizes = [8, 8], strides = [1, 1]} : vector<8x32xbf16> to vector<8x8xbf16>
    %36 = vector.extract_strided_slice %12 {offsets = [0, 8], sizes = [8, 8], strides = [1, 1]} : vector<8x32xbf16> to vector<8x8xbf16>
    %cst_10 = arith.constant dense<0.000000e+00> : vector<8x8xf32>
    %37 = tpu.matmul %34, %35, %cst_10 {dimension_numbers = #tpu.dot_dimension_numbers<[1], [1], [0], [0], [0, 0, 1, 0], [], []>} : vector<8x8xbf16>, vector<8x8xbf16>, vector<8x8xf32> -> vector<8x8xf32>
    %cst_11 = arith.constant -1.000000e+30 : f32
    %38 = vector.broadcast %cst_11 : f32 to vector<8x8xf32>
    %39 = arith.select %15, %37, %38 : vector<8x8xi1>, vector<8x8xf32>
    %cst_12 = arith.constant dense<0xFF800000> : vector<8xf32>
    %40 = vector.multi_reduction <maximumf>, %39, %cst_12 [1] : vector<8x8xf32> to vector<8xf32>
    %41 = vector.shape_cast %40 : vector<8xf32> to vector<8x1xf32>
    %42 = vector.broadcast %41 : vector<8x1xf32> to vector<8x8xf32>
    %43 = arith.subf %39, %42 : vector<8x8xf32>
    %44 = math.exp %43 : vector<8x8xf32>
    %cst_13 = arith.constant dense<0.000000e+00> : vector<8xf32>
    %45 = vector.multi_reduction <add>, %44, %cst_13 [1] : vector<8x8xf32> to vector<8xf32>
    %46 = vector.shape_cast %45 : vector<8xf32> to vector<8x1xf32>
    %47 = arith.truncf %44 : vector<8x8xf32> to vector<8x8xbf16>
    %cst_14 = arith.constant dense<0.000000e+00> : vector<8x8xf32>
    %48 = tpu.matmul %47, %36, %cst_14 {dimension_numbers = #tpu.dot_dimension_numbers<[1], [0], [0], [1], [0, 0, 1, 1], [], []>} : vector<8x8xbf16>, vector<8x8xbf16>, vector<8x8xf32> -> vector<8x8xf32>
    %49 = tpu.reciprocal %46 {approx = true} : vector<8x1xf32> -> vector<8x1xf32>
    %50 = vector.broadcast %49 : vector<8x1xf32> to vector<8x8xf32>
    %51 = arith.mulf %48, %50 : vector<8x8xf32>
    %52 = vector.extract_strided_slice %8 {offsets = [0, 16], sizes = [8, 8], strides = [1, 1]} : vector<8x32xbf16> to vector<8x8xbf16>
    %53 = vector.extract_strided_slice %10 {offsets = [0, 16], sizes = [8, 8], strides = [1, 1]} : vector<8x32xbf16> to vector<8x8xbf16>
    %54 = vector.extract_strided_slice %12 {offsets = [0, 16], sizes = [8, 8], strides = [1, 1]} : vector<8x32xbf16> to vector<8x8xbf16>
    %cst_15 = arith.constant dense<0.000000e+00> : vector<8x8xf32>
    %55 = tpu.matmul %52, %53, %cst_15 {dimension_numbers = #tpu.dot_dimension_numbers<[1], [1], [0], [0], [0, 0, 1, 0], [], []>} : vector<8x8xbf16>, vector<8x8xbf16>, vector<8x8xf32> -> vector<8x8xf32>
    %cst_16 = arith.constant -1.000000e+30 : f32
    %56 = vector.broadcast %cst_16 : f32 to vector<8x8xf32>
    %57 = arith.select %15, %55, %56 : vector<8x8xi1>, vector<8x8xf32>
    %cst_17 = arith.constant dense<0xFF800000> : vector<8xf32>
    %58 = vector.multi_reduction <maximumf>, %57, %cst_17 [1] : vector<8x8xf32> to vector<8xf32>
    %59 = vector.shape_cast %58 : vector<8xf32> to vector<8x1xf32>
    %60 = vector.broadcast %59 : vector<8x1xf32> to vector<8x8xf32>
    %61 = arith.subf %57, %60 : vector<8x8xf32>
    %62 = math.exp %61 : vector<8x8xf32>
    %cst_18 = arith.constant dense<0.000000e+00> : vector<8xf32>
    %63 = vector.multi_reduction <add>, %62, %cst_18 [1] : vector<8x8xf32> to vector<8xf32>
    %64 = vector.shape_cast %63 : vector<8xf32> to vector<8x1xf32>
    %65 = arith.truncf %62 : vector<8x8xf32> to vector<8x8xbf16>
    %cst_19 = arith.constant dense<0.000000e+00> : vector<8x8xf32>
    %66 = tpu.matmul %65, %54, %cst_19 {dimension_numbers = #tpu.dot_dimension_numbers<[1], [0], [0], [1], [0, 0, 1, 1], [], []>} : vector<8x8xbf16>, vector<8x8xbf16>, vector<8x8xf32> -> vector<8x8xf32>
    %67 = tpu.reciprocal %64 {approx = true} : vector<8x1xf32> -> vector<8x1xf32>
    %68 = vector.broadcast %67 : vector<8x1xf32> to vector<8x8xf32>
    %69 = arith.mulf %66, %68 : vector<8x8xf32>
    %70 = vector.extract_strided_slice %8 {offsets = [0, 24], sizes = [8, 8], strides = [1, 1]} : vector<8x32xbf16> to vector<8x8xbf16>
    %71 = vector.extract_strided_slice %10 {offsets = [0, 24], sizes = [8, 8], strides = [1, 1]} : vector<8x32xbf16> to vector<8x8xbf16>
    %72 = vector.extract_strided_slice %12 {offsets = [0, 24], sizes = [8, 8], strides = [1, 1]} : vector<8x32xbf16> to vector<8x8xbf16>
    %cst_20 = arith.constant dense<0.000000e+00> : vector<8x8xf32>
    %73 = tpu.matmul %70, %71, %cst_20 {dimension_numbers = #tpu.dot_dimension_numbers<[1], [1], [0], [0], [0, 0, 1, 0], [], []>} : vector<8x8xbf16>, vector<8x8xbf16>, vector<8x8xf32> -> vector<8x8xf32>
    %cst_21 = arith.constant -1.000000e+30 : f32
    %74 = vector.broadcast %cst_21 : f32 to vector<8x8xf32>
    %75 = arith.select %15, %73, %74 : vector<8x8xi1>, vector<8x8xf32>
    %cst_22 = arith.constant dense<0xFF800000> : vector<8xf32>
    %76 = vector.multi_reduction <maximumf>, %75, %cst_22 [1] : vector<8x8xf32> to vector<8xf32>
    %77 = vector.shape_cast %76 : vector<8xf32> to vector<8x1xf32>
    %78 = vector.broadcast %77 : vector<8x1xf32> to vector<8x8xf32>
    %79 = arith.subf %75, %78 : vector<8x8xf32>
    %80 = math.exp %79 : vector<8x8xf32>
    %cst_23 = arith.constant dense<0.000000e+00> : vector<8xf32>
    %81 = vector.multi_reduction <add>, %80, %cst_23 [1] : vector<8x8xf32> to vector<8xf32>
    %82 = vector.shape_cast %81 : vector<8xf32> to vector<8x1xf32>
    %83 = arith.truncf %80 : vector<8x8xf32> to vector<8x8xbf16>
    %cst_24 = arith.constant dense<0.000000e+00> : vector<8x8xf32>
    %84 = tpu.matmul %83, %72, %cst_24 {dimension_numbers = #tpu.dot_dimension_numbers<[1], [0], [0], [1], [0, 0, 1, 1], [], []>} : vector<8x8xbf16>, vector<8x8xbf16>, vector<8x8xf32> -> vector<8x8xf32>
    %85 = tpu.reciprocal %82 {approx = true} : vector<8x1xf32> -> vector<8x1xf32>
    %86 = vector.broadcast %85 : vector<8x1xf32> to vector<8x8xf32>
    %87 = arith.mulf %84, %86 : vector<8x8xf32>
    %88 = tpu.concatenate %33, %51, %69, %87 in 1 : vector<8x8xf32>, vector<8x8xf32>, vector<8x8xf32>, vector<8x8xf32> -> vector<8x32xf32>
    %89 = arith.truncf %88 : vector<8x32xf32> to vector<8x32xbf16>
    %c0_25 = arith.constant 0 : index
    %c0_26 = arith.constant 0 : index
    %90 = vector.load %arg3[%c0_25, %c0_26] : memref<32x32xbf16, #tpu.memory_space<vmem>>, vector<32x32xbf16>
    %cst_27 = arith.constant dense<0.000000e+00> : vector<8x32xf32>
    %91 = tpu.matmul %89, %90, %cst_27 {dimension_numbers = #tpu.dot_dimension_numbers<[1], [0], [0], [1], [0, 0, 1, 1], [], []>} : vector<8x32xbf16>, vector<32x32xbf16>, vector<8x32xf32> -> vector<8x32xf32>
    %92 = arith.addf %2, %91 : vector<8x32xf32>
    %cst_28 = arith.constant dense<0.000000e+00> : vector<8xf32>
    %93 = vector.multi_reduction <add>, %92, %cst_28 [1] : vector<8x32xf32> to vector<8xf32>
    %94 = vector.shape_cast %93 : vector<8xf32> to vector<8x1xf32>
    %cst_29 = arith.constant 3.200000e+01 : f32
    %95 = vector.broadcast %cst_29 : f32 to vector<8x1xf32>
    %96 = arith.divf %94, %95 : vector<8x1xf32>
    %97 = arith.mulf %92, %92 : vector<8x32xf32>
    %cst_30 = arith.constant dense<0.000000e+00> : vector<8xf32>
    %98 = vector.multi_reduction <add>, %97, %cst_30 [1] : vector<8x32xf32> to vector<8xf32>
    %99 = vector.shape_cast %98 : vector<8xf32> to vector<8x1xf32>
    %cst_31 = arith.constant 3.200000e+01 : f32
    %100 = vector.broadcast %cst_31 : f32 to vector<8x1xf32>
    %101 = arith.divf %99, %100 : vector<8x1xf32>
    %102 = arith.mulf %96, %96 : vector<8x1xf32>
    %103 = arith.subf %101, %102 : vector<8x1xf32>
    %104 = vector.broadcast %96 : vector<8x1xf32> to vector<8x32xf32>
    %105 = arith.subf %92, %104 : vector<8x32xf32>
    %cst_32 = arith.constant 9.99999974E-6 : f32
    %106 = vector.broadcast %cst_32 : f32 to vector<8x1xf32>
    %107 = arith.addf %103, %106 : vector<8x1xf32>
    %108 = math.rsqrt %107 : vector<8x1xf32>
    %109 = vector.broadcast %108 : vector<8x1xf32> to vector<8x32xf32>
    %110 = arith.mulf %105, %109 : vector<8x32xf32>
    %c0_33 = arith.constant 0 : index
    %c0_34 = arith.constant 0 : index
    %111 = vector.load %arg4[%c0_33, %c0_34] : memref<1x32xf32, #tpu.memory_space<vmem>>, vector<1x32xf32>
    %112 = vector.broadcast %111 : vector<1x32xf32> to vector<8x32xf32>
    %113 = arith.mulf %110, %112 : vector<8x32xf32>
    %c0_35 = arith.constant 0 : index
    %c0_36 = arith.constant 0 : index
    %114 = vector.load %arg5[%c0_35, %c0_36] : memref<1x32xf32, #tpu.memory_space<vmem>>, vector<1x32xf32>
    %115 = vector.broadcast %114 : vector<1x32xf32> to vector<8x32xf32>
    %116 = arith.addf %113, %115 : vector<8x32xf32>
    %117 = arith.truncf %116 : vector<8x32xf32> to vector<8x32xbf16>
    %c0_37 = arith.constant 0 : index
    %c0_38 = arith.constant 0 : index
    %118 = vector.load %arg6[%c0_37, %c0_38] : memref<32x128xbf16, #tpu.memory_space<vmem>>, vector<32x128xbf16>
    %cst_39 = arith.constant dense<0.000000e+00> : vector<8x128xf32>
    %119 = tpu.matmul %117, %118, %cst_39 {dimension_numbers = #tpu.dot_dimension_numbers<[1], [0], [0], [1], [0, 0, 1, 1], [], []>} : vector<8x32xbf16>, vector<32x128xbf16>, vector<8x128xf32> -> vector<8x128xf32>
    %cst_40 = arith.constant 0.000000e+00 : f32
    %120 = vector.broadcast %cst_40 : f32 to vector<8x128xf32>
    %121 = arith.maximumf %119, %120 : vector<8x128xf32>
    %122 = arith.truncf %121 : vector<8x128xf32> to vector<8x128xbf16>
    %c0_41 = arith.constant 0 : index
    %c0_42 = arith.constant 0 : index
    %123 = vector.load %arg7[%c0_41, %c0_42] : memref<128x32xbf16, #tpu.memory_space<vmem>>, vector<128x32xbf16>
    %cst_43 = arith.constant dense<0.000000e+00> : vector<8x32xf32>
    %124 = tpu.matmul %122, %123, %cst_43 {dimension_numbers = #tpu.dot_dimension_numbers<[1], [0], [0], [1], [0, 0, 1, 1], [], []>} : vector<8x128xbf16>, vector<128x32xbf16>, vector<8x32xf32> -> vector<8x32xf32>
    %125 = arith.addf %116, %124 : vector<8x32xf32>
    %cst_44 = arith.constant dense<0.000000e+00> : vector<8xf32>
    %126 = vector.multi_reduction <add>, %125, %cst_44 [1] : vector<8x32xf32> to vector<8xf32>
    %127 = vector.shape_cast %126 : vector<8xf32> to vector<8x1xf32>
    %cst_45 = arith.constant 3.200000e+01 : f32
    %128 = vector.broadcast %cst_45 : f32 to vector<8x1xf32>
    %129 = arith.divf %127, %128 : vector<8x1xf32>
    %130 = arith.mulf %125, %125 : vector<8x32xf32>
    %cst_46 = arith.constant dense<0.000000e+00> : vector<8xf32>
    %131 = vector.multi_reduction <add>, %130, %cst_46 [1] : vector<8x32xf32> to vector<8xf32>
    %132 = vector.shape_cast %131 : vector<8xf32> to vector<8x1xf32>
    %cst_47 = arith.constant 3.200000e+01 : f32
    %133 = vector.broadcast %cst_47 : f32 to vector<8x1xf32>
    %134 = arith.divf %132, %133 : vector<8x1xf32>
    %135 = arith.mulf %129, %129 : vector<8x1xf32>
    %136 = arith.subf %134, %135 : vector<8x1xf32>
    %137 = vector.broadcast %129 : vector<8x1xf32> to vector<8x32xf32>
    %138 = arith.subf %125, %137 : vector<8x32xf32>
    %cst_48 = arith.constant 9.99999974E-6 : f32
    %139 = vector.broadcast %cst_48 : f32 to vector<8x1xf32>
    %140 = arith.addf %136, %139 : vector<8x1xf32>
    %141 = math.rsqrt %140 : vector<8x1xf32>
    %142 = vector.broadcast %141 : vector<8x1xf32> to vector<8x32xf32>
    %143 = arith.mulf %138, %142 : vector<8x32xf32>
    %c0_49 = arith.constant 0 : index
    %c0_50 = arith.constant 0 : index
    %144 = vector.load %arg8[%c0_49, %c0_50] : memref<1x32xf32, #tpu.memory_space<vmem>>, vector<1x32xf32>
    %145 = vector.broadcast %144 : vector<1x32xf32> to vector<8x32xf32>
    %146 = arith.mulf %143, %145 : vector<8x32xf32>
    %c0_51 = arith.constant 0 : index
    %c0_52 = arith.constant 0 : index
    %147 = vector.load %arg9[%c0_51, %c0_52] : memref<1x32xf32, #tpu.memory_space<vmem>>, vector<1x32xf32>
    %148 = vector.broadcast %147 : vector<1x32xf32> to vector<8x32xf32>
    %149 = arith.addf %146, %148 : vector<8x32xf32>
    %150 = arith.truncf %149 : vector<8x32xf32> to vector<8x32xbf16>
    %c0_53 = arith.constant 0 : index
    %c0_54 = arith.constant 0 : index
    %c0_55 = arith.constant 0 : index
    %151 = vector.load %arg10[%c0_53, %c0_54, %c0_55] : memref<1x8x32xbf16, #tpu.memory_space<vmem>>, vector<1x8x32xbf16>
    %152 = vector.shape_cast %151 : vector<1x8x32xbf16> to vector<8x32xbf16>
    %153 = vector.shape_cast %150 : vector<8x32xbf16> to vector<1x8x32xbf16>
    tpu.vector_store %arg10[%c0_53, %c0_54, %c0_55], %153 {strides = array<i32>} : memref<1x8x32xbf16, #tpu.memory_space<vmem>>, vector<1x8x32xbf16>,
    return
  }
  func.func @transform_0(%arg0: i32) -> (i32, i32, i32) {
    %c0_i32 = arith.constant 0 : i32
    %c0_i32_0 = arith.constant 0 : i32
    %c0_i32_1 = arith.constant 0 : i32
    return %arg0, %c0_i32, %c0_i32_0 : i32, i32, i32
  }
  func.func @transform_1(%arg0: i32) -> (i32, i32) {
    %c0_i32 = arith.constant 0 : i32
    %c0_i32_0 = arith.constant 0 : i32
    %c0_i32_1 = arith.constant 0 : i32
    return %c0_i32, %c0_i32_0 : i32, i32
  }
  func.func @transform_2(%arg0: i32) -> (i32, i32) {
    %c0_i32 = arith.constant 0 : i32
    %c0_i32_0 = arith.constant 0 : i32
    %c0_i32_1 = arith.constant 0 : i32
    return %c0_i32, %c0_i32_0 : i32, i32
  }
  func.func @transform_3(%arg0: i32) -> (i32, i32) {
    %c0_i32 = arith.constant 0 : i32
    %c0_i32_0 = arith.constant 0 : i32
    %c0_i32_1 = arith.constant 0 : i32
    return %c0_i32, %c0_i32_0 : i32, i32
  }
  func.func @transform_4(%arg0: i32) -> (i32, i32) {
    %c0_i32 = arith.constant 0 : i32
    %c0_i32_0 = arith.constant 0 : i32
    %c0_i32_1 = arith.constant 0 : i32
    return %c0_i32, %c0_i32_0 : i32, i32
  }
  func.func @transform_5(%arg0: i32) -> (i32, i32) {
    %c0_i32 = arith.constant 0 : i32
    %c0_i32_0 = arith.constant 0 : i32
    %c0_i32_1 = arith.constant 0 : i32
    return %c0_i32, %c0_i32_0 : i32, i32
  }
  func.func @transform_6(%arg0: i32) -> (i32, i32) {
    %c0_i32 = arith.constant 0 : i32
    %c0_i32_0 = arith.constant 0 : i32
    %c0_i32_1 = arith.constant 0 : i32
    return %c0_i32, %c0_i32_0 : i32, i32
  }
  func.func @transform_7(%arg0: i32) -> (i32, i32) {
    %c0_i32 = arith.constant 0 : i32
    %c0_i32_0 = arith.constant 0 : i32
    %c0_i32_1 = arith.constant 0 : i32
    return %c0_i32, %c0_i32_0 : i32, i32
  }
  func.func @transform_8(%arg0: i32) -> (i32, i32) {
    %c0_i32 = arith.constant 0 : i32
    %c0_i32_0 = arith.constant 0 : i32
    %c0_i32_1 = arith.constant 0 : i32
    return %c0_i32, %c0_i32_0 : i32, i32
  }
  func.func @transform_9(%arg0: i32) -> (i32, i32, i32) {
    %c0_i32 = arith.constant 0 : i32
    %c0_i32_0 = arith.constant 0 : i32
    %c0_i32_1 = arith.constant 0 : i32
    return %arg0, %c0_i32, %c0_i32_0 : i32, i32, i32
  }
}

module attributes {stable_mosaic.version = 11 : i64} {
  func.func @_decoder_block_kernel(%arg0: i32, %arg1: memref<1x8x32xbf16, #tpu.memory_space<vmem>>, %arg2: memref<32x96xbf16, #tpu.memory_space<vmem>>, %arg3: memref<32x32xbf16, #tpu.memory_space<vmem>>, %arg4: memref<1x32xf32, #tpu.memory_space<vmem>>, %arg5: memref<1x32xf32, #tpu.memory_space<vmem>>, %arg6: memref<32x128xbf16, #tpu.memory_space<vmem>>, %arg7: memref<128x32xbf16, #tpu.memory_space<vmem>>, %arg8: memref<1x32xf32, #tpu.memory_space<vmem>>, %arg9: memref<1x32xf32, #tpu.memory_space<vmem>>, %arg10: memref<1x8x32xbf16, #tpu.memory_space<vmem>>) attributes {dimension_semantics = [#tpu.dimension_semantics<parallel>], iteration_bounds = array<i64: 2>, scalar_prefetch = 0 : i64, scratch_operands = 0 : i64, tpu.core_type = #tpu.core_type<tc>, window_params = [{transform_indices = @transform_0, window_bounds = array<i64: 1, 8, 32>}, {pipeline_mode = #tpu.pipeline_mode<synchronous>, transform_indices = @transform_1, window_bounds = array<i64: 32, 96>}, {pipeline_mode = #tpu.pipeline_mode<synchronous>, transform_indices = @transform_2, window_bounds = array<i64: 32, 32>}, {pipeline_mode = #tpu.pipeline_mode<synchronous>, transform_indices = @transform_3, window_bounds = array<i64: 1, 32>}, {pipeline_mode = #tpu.pipeline_mode<synchronous>, transform_indices = @transform_4, window_bounds = array<i64: 1, 32>}, {pipeline_mode = #tpu.pipeline_mode<synchronous>, transform_indices = @transform_5, window_bounds = array<i64: 32, 128>}, {pipeline_mode = #tpu.pipeline_mode<synchronous>, transform_indices = @transform_6, window_bounds = array<i64: 128, 32>}, {pipeline_mode = #tpu.pipeline_mode<synchronous>, transform_indices = @transform_7, window_bounds = array<i64: 1, 32>}, {pipeline_mode = #tpu.pipeline_mode<synchronous>, transform_indices = @transform_8, window_bounds = array<i64: 1, 32>}, {transform_indices = @transform_9, window_bounds = array<i64: 1, 8, 32>}]} {
    %c0 = arith.constant 0 : index
    %c0_0 = arith.constant 0 : index
    %c0_1 = arith.constant 0 : index
    %0 = vector.load %arg1[%c0, %c0_0, %c0_1] : memref<1x8x32xbf16, #tpu.memory_space<vmem>>, vector<1x8x32xbf16>
    %1 = vector.shape_cast %0 : vector<1x8x32xbf16> to vector<8x32xbf16>
    %2 = arith.extf %1 : vector<8x32xbf16> to vector<8x32xf32>
    %c0_2 = arith.constant 0 : index
    %c0_3 = arith.constant 0 : index
    %3 = vector.load %arg2[%c0_2, %c0_3] : memref<32x96xbf16, #tpu.memory_space<vmem>>, vector<32x96xbf16>
    %cst = arith.constant dense<0.000000e+00> : vector<8x96xf32>
    %4 = tpu.matmul %1, %3, %cst {dimension_numbers = #tpu.dot_dimension_numbers<[1], [0], [0], [1], [0, 0, 1, 1], [], []>} : vector<8x32xbf16>, vector<32x96xbf16>, vector<8x96xf32> -> vector<8x96xf32>
    %5 = vector.extract_strided_slice %4 {offsets = [0, 0], sizes = [8, 32], strides = [1, 1]} : vector<8x96xf32> to vector<8x32xf32>
    %cst_4 = arith.constant 0.353553385 : f32
    %6 = vector.broadcast %cst_4 : f32 to vector<8x32xf32>
    %7 = arith.mulf %5, %6 : vector<8x32xf32>
    %8 = arith.truncf %7 : vector<8x32xf32> to vector<8x32xbf16>
    %9 = vector.extract_strided_slice %4 {offsets = [0, 32], sizes = [8, 32], strides = [1, 1]} : vector<8x96xf32> to vector<8x32xf32>
    %10 = arith.truncf %9 : vector<8x32xf32> to vector<8x32xbf16>
    %11 = vector.extract_strided_slice %4 {offsets = [0, 64], sizes = [8, 32], strides = [1, 1]} : vector<8x96xf32> to vector<8x32xf32>
    %12 = arith.truncf %11 : vector<8x32xf32> to vector<8x32xbf16>
    %13 = tpu.iota {dimensions = array<i32: 0>} : vector<8x8xi32>
    %14 = tpu.iota {dimensions = array<i32: 1>} : vector<8x8xi32>
    %15 = arith.cmpi sge, %13, %14 : vector<8x8xi32>
    %16 = vector.extract_strided_slice %8 {offsets = [0, 0], sizes = [8, 8], strides = [1, 1]} : vector<8x32xbf16> to vector<8x8xbf16>
    %17 = vector.extract_strided_slice %10 {offsets = [0, 0], sizes = [8, 8], strides = [1, 1]} : vector<8x32xbf16> to vector<8x8xbf16>
    %18 = vector.extract_strided_slice %12 {offsets = [0, 0], sizes = [8, 8], strides = [1, 1]} : vector<8x32xbf16> to vector<8x8xbf16>
    %cst_5 = arith.constant dense<0.000000e+00> : vector<8x8xf32>
    %19 = tpu.matmul %16, %17, %cst_5 {dimension_numbers = #tpu.dot_dimension_numbers<[1], [1], [0], [0], [0, 0, 1, 0], [], []>} : vector<8x8xbf16>, vector<8x8xbf16>, vector<8x8xf32> -> vector<8x8xf32>
    %cst_6 = arith.constant -1.000000e+30 : f32
    %20 = vector.broadcast %cst_6 : f32 to vector<8x8xf32>
    %21 = arith.select %15, %19, %20 : vector<8x8xi1>, vector<8x8xf32>
    %cst_7 = arith.constant dense<0xFF800000> : vector<8xf32>
    %22 = vector.multi_reduction <maximumf>, %21, %cst_7 [1] : vector<8x8xf32> to vector<8xf32>
    %23 = vector.shape_cast %22 : vector<8xf32> to vector<8x1xf32>
    %24 = vector.broadcast %23 : vector<8x1xf32> to vector<8x8xf32>
    %25 = arith.subf %21, %24 : vector<8x8xf32>
    %26 = math.exp %25 : vector<8x8xf32>
    %cst_8 = arith.constant dense<0.000000e+00> : vector<8xf32>
    %27 = vector.multi_reduction <add>, %26, %cst_8 [1] : vector<8x8xf32> to vector<8xf32>
    %28 = vector.shape_cast %27 : vector<8xf32> to vector<8x1xf32>
    %29 = arith.truncf %26 : vector<8x8xf32> to vector<8x8xbf16>
    %cst_9 = arith.constant dense<0.000000e+00> : vector<8x8xf32>
    %30 = tpu.matmul %29, %18, %cst_9 {dimension_numbers = #tpu.dot_dimension_numbers<[1], [0], [0], [1], [0, 0, 1, 1], [], []>} : vector<8x8xbf16>, vector<8x8xbf16>, vector<8x8xf32> -> vector<8x8xf32>
    %31 = tpu.reciprocal %28 {approx = true} : vector<8x1xf32> -> vector<8x1xf32>
    %32 = vector.broadcast %31 : vector<8x1xf32> to vector<8x8xf32>
    %33 = arith.mulf %30, %32 : vector<8x8xf32>
    %34 = vector.extract_strided_slice %8 {offsets = [0, 8], sizes = [8, 8], strides = [1, 1]} : vector<8x32xbf16> to vector<8x8xbf16>
    %35 = vector.extract_strided_slice %10 {offsets = [0, 8], sizes = [8, 8], strides = [1, 1]} : vector<8x32xbf16> to vector<8x8xbf16>
    %36 = vector.extract_strided_slice %12 {offsets = [0, 8], sizes = [8, 8], strides = [1, 1]} : vector<8x32xbf16> to vector<8x8xbf16>
    %cst_10 = arith.constant dense<0.000000e+00> : vector<8x8xf32>
    %37 = tpu.matmul %34, %35, %cst_10 {dimension_numbers = #tpu.dot_dimension_numbers<[1], [1], [0], [0], [0, 0, 1, 0], [], []>} : vector<8x8xbf16>, vector<8x8xbf16>, vector<8x8xf32> -> vector<8x8xf32>
    %cst_11 = arith.constant -1.000000e+30 : f32
    %38 = vector.broadcast %cst_11 : f32 to vector<8x8xf32>
    %39 = arith.select %15, %37, %38 : vector<8x8xi1>, vector<8x8xf32>
    %cst_12 = arith.constant dense<0xFF800000> : vector<8xf32>
    %40 = vector.multi_reduction <maximumf>, %39, %cst_12 [1] : vector<8x8xf32> to vector<8xf32>
    %41 = vector.shape_cast %40 : vector<8xf32> to vector<8x1xf32>
    %42 = vector.broadcast %41 : vector<8x1xf32> to vector<8x8xf32>
    %43 = arith.subf %39, %42 : vector<8x8xf32>
    %44 = math.exp %43 : vector<8x8xf32>
    %cst_13 = arith.constant dense<0.000000e+00> : vector<8xf32>
    %45 = vector.multi_reduction <add>, %44, %cst_13 [1] : vector<8x8xf32> to vector<8xf32>
    %46 = vector.shape_cast %45 : vector<8xf32> to vector<8x1xf32>
    %47 = arith.truncf %44 : vector<8x8xf32> to vector<8x8xbf16>
    %cst_14 = arith.constant dense<0.000000e+00> : vector<8x8xf32>
    %48 = tpu.matmul %47, %36, %cst_14 {dimension_numbers = #tpu.dot_dimension_numbers<[1], [0], [0], [1], [0, 0, 1, 1], [], []>} : vector<8x8xbf16>, vector<8x8xbf16>, vector<8x8xf32> -> vector<8x8xf32>
    %49 = tpu.reciprocal %46 {approx = true} : vector<8x1xf32> -> vector<8x1xf32>
    %50 = vector.broadcast %49 : vector<8x1xf32> to vector<8x8xf32>
    %51 = arith.mulf %48, %50 : vector<8x8xf32>
    %52 = vector.extract_strided_slice %8 {offsets = [0, 16], sizes = [8, 8], strides = [1, 1]} : vector<8x32xbf16> to vector<8x8xbf16>
    %53 = vector.extract_strided_slice %10 {offsets = [0, 16], sizes = [8, 8], strides = [1, 1]} : vector<8x32xbf16> to vector<8x8xbf16>
    %54 = vector.extract_strided_slice %12 {offsets = [0, 16], sizes = [8, 8], strides = [1, 1]} : vector<8x32xbf16> to vector<8x8xbf16>
    %cst_15 = arith.constant dense<0.000000e+00> : vector<8x8xf32>
    %55 = tpu.matmul %52, %53, %cst_15 {dimension_numbers = #tpu.dot_dimension_numbers<[1], [1], [0], [0], [0, 0, 1, 0], [], []>} : vector<8x8xbf16>, vector<8x8xbf16>, vector<8x8xf32> -> vector<8x8xf32>
    %cst_16 = arith.constant -1.000000e+30 : f32
    %56 = vector.broadcast %cst_16 : f32 to vector<8x8xf32>
    %57 = arith.select %15, %55, %56 : vector<8x8xi1>, vector<8x8xf32>
    %cst_17 = arith.constant dense<0xFF800000> : vector<8xf32>
    %58 = vector.multi_reduction <maximumf>, %57, %cst_17 [1] : vector<8x8xf32> to vector<8xf32>
    %59 = vector.shape_cast %58 : vector<8xf32> to vector<8x1xf32>
    %60 = vector.broadcast %59 : vector<8x1xf32> to vector<8x8xf32>
    %61 = arith.subf %57, %60 : vector<8x8xf32>
    %62 = math.exp %61 : vector<8x8xf32>
    %cst_18 = arith.constant dense<0.000000e+00> : vector<8xf32>
    %63 = vector.multi_reduction <add>, %62, %cst_18 [1] : vector<8x8xf32> to vector<8xf32>
    %64 = vector.shape_cast %63 : vector<8xf32> to vector<8x1xf32>
    %65 = arith.truncf %62 : vector<8x8xf32> to vector<8x8xbf16>
    %cst_19 = arith.constant dense<0.000000e+00> : vector<8x8xf32>
    %66 = tpu.matmul %65, %54, %cst_19 {dimension_numbers = #tpu.dot_dimension_numbers<[1], [0], [0], [1], [0, 0, 1, 1], [], []>} : vector<8x8xbf16>, vector<8x8xbf16>, vector<8x8xf32> -> vector<8x8xf32>
    %67 = tpu.reciprocal %64 {approx = true} : vector<8x1xf32> -> vector<8x1xf32>
    %68 = vector.broadcast %67 : vector<8x1xf32> to vector<8x8xf32>
    %69 = arith.mulf %66, %68 : vector<8x8xf32>
    %70 = vector.extract_strided_slice %8 {offsets = [0, 24], sizes = [8, 8], strides = [1, 1]} : vector<8x32xbf16> to vector<8x8xbf16>
    %71 = vector.extract_strided_slice %10 {offsets = [0, 24], sizes = [8, 8], strides = [1, 1]} : vector<8x32xbf16> to vector<8x8xbf16>
    %72 = vector.extract_strided_slice %12 {offsets = [0, 24], sizes = [8, 8], strides = [1, 1]} : vector<8x32xbf16> to vector<8x8xbf16>
    %cst_20 = arith.constant dense<0.000000e+00> : vector<8x8xf32>
    %73 = tpu.matmul %70, %71, %cst_20 {dimension_numbers = #tpu.dot_dimension_numbers<[1], [1], [0], [0], [0, 0, 1, 0], [], []>} : vector<8x8xbf16>, vector<8x8xbf16>, vector<8x8xf32> -> vector<8x8xf32>
    %cst_21 = arith.constant -1.000000e+30 : f32
    %74 = vector.broadcast %cst_21 : f32 to vector<8x8xf32>
    %75 = arith.select %15, %73, %74 : vector<8x8xi1>, vector<8x8xf32>
    %cst_22 = arith.constant dense<0xFF800000> : vector<8xf32>
    %76 = vector.multi_reduction <maximumf>, %75, %cst_22 [1] : vector<8x8xf32> to vector<8xf32>
    %77 = vector.shape_cast %76 : vector<8xf32> to vector<8x1xf32>
    %78 = vector.broadcast %77 : vector<8x1xf32> to vector<8x8xf32>
    %79 = arith.subf %75, %78 : vector<8x8xf32>
    %80 = math.exp %79 : vector<8x8xf32>
    %cst_23 = arith.constant dense<0.000000e+00> : vector<8xf32>
    %81 = vector.multi_reduction <add>, %80, %cst_23 [1] : vector<8x8xf32> to vector<8xf32>
    %82 = vector.shape_cast %81 : vector<8xf32> to vector<8x1xf32>
    %83 = arith.truncf %80 : vector<8x8xf32> to vector<8x8xbf16>
    %cst_24 = arith.constant dense<0.000000e+00> : vector<8x8xf32>
    %84 = tpu.matmul %83, %72, %cst_24 {dimension_numbers = #tpu.dot_dimension_numbers<[1], [0], [0], [1], [0, 0, 1, 1], [], []>} : vector<8x8xbf16>, vector<8x8xbf16>, vector<8x8xf32> -> vector<8x8xf32>
    %85 = tpu.reciprocal %82 {approx = true} : vector<8x1xf32> -> vector<8x1xf32>
    %86 = vector.broadcast %85 : vector<8x1xf32> to vector<8x8xf32>
    %87 = arith.mulf %84, %86 : vector<8x8xf32>
    %88 = tpu.concatenate %33, %51, %69, %87 in 1 : vector<8x8xf32>, vector<8x8xf32>, vector<8x8xf32>, vector<8x8xf32> -> vector<8x32xf32>
    %89 = arith.truncf %88 : vector<8x32xf32> to vector<8x32xbf16>
    %c0_25 = arith.constant 0 : index
    %c0_26 = arith.constant 0 : index
    %90 = vector.load %arg3[%c0_25, %c0_26] : memref<32x32xbf16, #tpu.memory_space<vmem>>, vector<32x32xbf16>
    %cst_27 = arith.constant dense<0.000000e+00> : vector<8x32xf32>
    %91 = tpu.matmul %89, %90, %cst_27 {dimension_numbers = #tpu.dot_dimension_numbers<[1], [0], [0], [1], [0, 0, 1, 1], [], []>} : vector<8x32xbf16>, vector<32x32xbf16>, vector<8x32xf32> -> vector<8x32xf32>
    %92 = arith.addf %2, %91 : vector<8x32xf32>
    %cst_28 = arith.constant dense<0.000000e+00> : vector<8xf32>
    %93 = vector.multi_reduction <add>, %92, %cst_28 [1] : vector<8x32xf32> to vector<8xf32>
    %94 = vector.shape_cast %93 : vector<8xf32> to vector<8x1xf32>
    %cst_29 = arith.constant 3.200000e+01 : f32
    %95 = vector.broadcast %cst_29 : f32 to vector<8x1xf32>
    %96 = arith.divf %94, %95 : vector<8x1xf32>
    %97 = arith.mulf %92, %92 : vector<8x32xf32>
    %cst_30 = arith.constant dense<0.000000e+00> : vector<8xf32>
    %98 = vector.multi_reduction <add>, %97, %cst_30 [1] : vector<8x32xf32> to vector<8xf32>
    %99 = vector.shape_cast %98 : vector<8xf32> to vector<8x1xf32>
    %cst_31 = arith.constant 3.200000e+01 : f32
    %100 = vector.broadcast %cst_31 : f32 to vector<8x1xf32>
    %101 = arith.divf %99, %100 : vector<8x1xf32>
    %102 = arith.mulf %96, %96 : vector<8x1xf32>
    %103 = arith.subf %101, %102 : vector<8x1xf32>
    %104 = vector.broadcast %96 : vector<8x1xf32> to vector<8x32xf32>
    %105 = arith.subf %92, %104 : vector<8x32xf32>
    %cst_32 = arith.constant 9.99999974E-6 : f32
    %106 = vector.broadcast %cst_32 : f32 to vector<8x1xf32>
    %107 = arith.addf %103, %106 : vector<8x1xf32>
    %108 = math.rsqrt %107 : vector<8x1xf32>
    %109 = vector.broadcast %108 : vector<8x1xf32> to vector<8x32xf32>
    %110 = arith.mulf %105, %109 : vector<8x32xf32>
    %c0_33 = arith.constant 0 : index
    %c0_34 = arith.constant 0 : index
    %111 = vector.load %arg4[%c0_33, %c0_34] : memref<1x32xf32, #tpu.memory_space<vmem>>, vector<1x32xf32>
    %112 = vector.broadcast %111 : vector<1x32xf32> to vector<8x32xf32>
    %113 = arith.mulf %110, %112 : vector<8x32xf32>
    %c0_35 = arith.constant 0 : index
    %c0_36 = arith.constant 0 : index
    %114 = vector.load %arg5[%c0_35, %c0_36] : memref<1x32xf32, #tpu.memory_space<vmem>>, vector<1x32xf32>
    %115 = vector.broadcast %114 : vector<1x32xf32> to vector<8x32xf32>
    %116 = arith.addf %113, %115 : vector<8x32xf32>
    %117 = arith.truncf %116 : vector<8x32xf32> to vector<8x32xbf16>
    %c0_37 = arith.constant 0 : index
    %c0_38 = arith.constant 0 : index
    %118 = vector.load %arg6[%c0_37, %c0_38] : memref<32x128xbf16, #tpu.memory_space<vmem>>, vector<32x128xbf16>
    %cst_39 = arith.constant dense<0.000000e+00> : vector<8x128xf32>
    %119 = tpu.matmul %117, %118, %cst_39 {dimension_numbers = #tpu.dot_dimension_numbers<[1], [0], [0], [1], [0, 0, 1, 1], [], []>} : vector<8x32xbf16>, vector<32x128xbf16>, vector<8x128xf32> -> vector<8x128xf32>
    %cst_40 = arith.constant 0.000000e+00 : f32
    %120 = vector.broadcast %cst_40 : f32 to vector<8x128xf32>
    %121 = arith.maximumf %119, %120 : vector<8x128xf32>
    %122 = arith.truncf %121 : vector<8x128xf32> to vector<8x128xbf16>
    %c0_41 = arith.constant 0 : index
    %c0_42 = arith.constant 0 : index
    %123 = vector.load %arg7[%c0_41, %c0_42] : memref<128x32xbf16, #tpu.memory_space<vmem>>, vector<128x32xbf16>
    %cst_43 = arith.constant dense<0.000000e+00> : vector<8x32xf32>
    %124 = tpu.matmul %122, %123, %cst_43 {dimension_numbers = #tpu.dot_dimension_numbers<[1], [0], [0], [1], [0, 0, 1, 1], [], []>} : vector<8x128xbf16>, vector<128x32xbf16>, vector<8x32xf32> -> vector<8x32xf32>
    %125 = arith.addf %116, %124 : vector<8x32xf32>
    %cst_44 = arith.constant dense<0.000000e+00> : vector<8xf32>
    %126 = vector.multi_reduction <add>, %125, %cst_44 [1] : vector<8x32xf32> to vector<8xf32>
    %127 = vector.shape_cast %126 : vector<8xf32> to vector<8x1xf32>
    %cst_45 = arith.constant 3.200000e+01 : f32
    %128 = vector.broadcast %cst_45 : f32 to vector<8x1xf32>
    %129 = arith.divf %127, %128 : vector<8x1xf32>
    %130 = arith.mulf %125, %125 : vector<8x32xf32>
    %cst_46 = arith.constant dense<0.000000e+00> : vector<8xf32>
    %131 = vector.multi_reduction <add>, %130, %cst_46 [1] : vector<8x32xf32> to vector<8xf32>
    %132 = vector.shape_cast %131 : vector<8xf32> to vector<8x1xf32>
    %cst_47 = arith.constant 3.200000e+01 : f32
    %133 = vector.broadcast %cst_47 : f32 to vector<8x1xf32>
    %134 = arith.divf %132, %133 : vector<8x1xf32>
    %135 = arith.mulf %129, %129 : vector<8x1xf32>
    %136 = arith.subf %134, %135 : vector<8x1xf32>
    %137 = vector.broadcast %129 : vector<8x1xf32> to vector<8x32xf32>
    %138 = arith.subf %125, %137 : vector<8x32xf32>
    %cst_48 = arith.constant 9.99999974E-6 : f32
    %139 = vector.broadcast %cst_48 : f32 to vector<8x1xf32>
    %140 = arith.addf %136, %139 : vector<8x1xf32>
    %141 = math.rsqrt %140 : vector<8x1xf32>
    %142 = vector.broadcast %141 : vector<8x1xf32> to vector<8x32xf32>
    %143 = arith.mulf %138, %142 : vector<8x32xf32>
    %c0_49 = arith.constant 0 : index
    %c0_50 = arith.constant 0 : index
    %144 = vector.load %arg8[%c0_49, %c0_50] : memref<1x32xf32, #tpu.memory_space<vmem>>, vector<1x32xf32>
    %145 = vector.broadcast %144 : vector<1x32xf32> to vector<8x32xf32>
    %146 = arith.mulf %143, %145 : vector<8x32xf32>
    %c0_51 = arith.constant 0 : index
    %c0_52 = arith.constant 0 : index
    %147 = vector.load %arg9[%c0_51, %c0_52] : memref<1x32xf32, #tpu.memory_space<vmem>>, vector<1x32xf32>
    %148 = vector.broadcast %147 : vector<1x32xf32> to vector<8x32xf32>
    %149 = arith.addf %146, %148 : vector<8x32xf32>
    %150 = arith.truncf %149 : vector<8x32xf32> to vector<8x32xbf16>
    %c0_53 = arith.constant 0 : index
    %c0_54 = arith.constant 0 : index
    %c0_55 = arith.constant 0 : index
    %151 = vector.load %arg10[%c0_53, %c0_54, %c0_55] : memref<1x8x32xbf16, #tpu.memory_space<vmem>>, vector<1x8x32xbf16>
    %152 = vector.shape_cast %151 : vector<1x8x32xbf16> to vector<8x32xbf16>
    %153 = vector.shape_cast %150 : vector<8x32xbf16> to vector<1x8x32xbf16>
    tpu.vector_store %arg10[%c0_53, %c0_54, %c0_55], %153 {strides = array<i32>} : memref<1x8x32xbf16, #tpu.memory_space<vmem>>, vector<1x8x32xbf16>,
    return
  }
  func.func @transform_0(%arg0: i32) -> (i32, i32, i32) {
    %c0_i32 = arith.constant 0 : i32
    %c0_i32_0 = arith.constant 0 : i32
    %c0_i32_1 = arith.constant 0 : i32
    return %arg0, %c0_i32, %c0_i32_0 : i32, i32, i32
  }
  func.func @transform_1(%arg0: i32) -> (i32, i32) {
    %c0_i32 = arith.constant 0 : i32
    %c0_i32_0 = arith.constant 0 : i32
    %c0_i32_1 = arith.constant 0 : i32
    return %c0_i32, %c0_i32_0 : i32, i32
  }
  func.func @transform_2(%arg0: i32) -> (i32, i32) {
    %c0_i32 = arith.constant 0 : i32
    %c0_i32_0 = arith.constant 0 : i32
    %c0_i32_1 = arith.constant 0 : i32
    return %c0_i32, %c0_i32_0 : i32, i32
  }
  func.func @transform_3(%arg0: i32) -> (i32, i32) {
    %c0_i32 = arith.constant 0 : i32
    %c0_i32_0 = arith.constant 0 : i32
    %c0_i32_1 = arith.constant 0 : i32
    return %c0_i32, %c0_i32_0 : i32, i32
  }
  func.func @transform_4(%arg0: i32) -> (i32, i32) {
    %c0_i32 = arith.constant 0 : i32
    %c0_i32_0 = arith.constant 0 : i32
    %c0_i32_1 = arith.constant 0 : i32
    return %c0_i32, %c0_i32_0 : i32, i32
  }
  func.func @transform_5(%arg0: i32) -> (i32, i32) {
    %c0_i32 = arith.constant 0 : i32
    %c0_i32_0 = arith.constant 0 : i32
    %c0_i32_1 = arith.constant 0 : i32
    return %c0_i32, %c0_i32_0 : i32, i32
  }
  func.func @transform_6(%arg0: i32) -> (i32, i32) {
    %c0_i32 = arith.constant 0 : i32
    %c0_i32_0 = arith.constant 0 : i32
    %c0_i32_1 = arith.constant 0 : i32
    return %c0_i32, %c0_i32_0 : i32, i32
  }
  func.func @transform_7(%arg0: i32) -> (i32, i32) {
    %c0_i32 = arith.constant 0 : i32
    %c0_i32_0 = arith.constant 0 : i32
    %c0_i32_1 = arith.constant 0 : i32
    return %c0_i32, %c0_i32_0 : i32, i32
  }
  func.func @transform_8(%arg0: i32) -> (i32, i32) {
    %c0_i32 = arith.constant 0 : i32
    %c0_i32_0 = arith.constant 0 : i32
    %c0_i32_1 = arith.constant 0 : i32
    return %c0_i32, %c0_i32_0 : i32, i32
  }
  func.func @transform_9(%arg0: i32) -> (i32, i32, i32) {
    %c0_i32 = arith.constant 0 : i32
    %c0_i32_0 = arith.constant 0 : i32
    %c0_i32_1 = arith.constant 0 : i32
    return %arg0, %c0_i32, %c0_i32_0 : i32, i32, i32
  }
}

</mosaic_0001>

<bundles_post_ra>
// kernel: tpu_custom_call.1
= control target key start
LH: loop header
LB: loop body
LE: loop exit
PB: predicated region body
PF: predicated region fallthrough
CT: control target
= control target key end

     0   :  { %14 = vsyncpa [#allocation3], 0  ;;  %s1864_s0 = inlined_call_operand.vmem [shape: bf16[2,8,32], index: 0, kind: input, shape index: {}]   ;;  %s1865_s1 = inlined_call_operand.vmem [shape: bf16[32,96], index: 1, kind: input, shape index: {}]   ;;  %s1866_s2 = inlined_call_operand.vmem [shape: bf16[32,32], index: 2, kind: input, shape index: {}]   ;;  %s1867_s3 = inlined_call_operand.vmem [shape: f32[1,32], index: 3, kind: input, shape index: {}]   ;;  %s1868_s4 = inlined_call_operand.vmem [shape: f32[1,32], index: 4, kind: input, shape index: {}]   ;;  %s1869_s5 = inlined_call_operand.vmem [shape: bf16[32,128], index: 5, kind: input, shape index: {}]   ;;  %s1870_s6 = inlined_call_operand.vmem [shape: bf16[128,32], index: 6, kind: input, shape index: {}]   ;;  %s1871_s7 = inlined_call_operand.vmem [shape: f32[1,32], index: 7, kind: input, shape index: {}]   ;;  %s1872_s8 = inlined_call_operand.vmem [shape: f32[1,32], index: 8, kind: input, shape index: {}]   ;;  %s1873_s9 = inlined_call_operand.hbm [shape: bf16[2,8,32], index: 9, kind: output, shape index: {}]  }
   0x1   :  { %16 = vsyncpa [#allocation3 + $0x1], 0  ;;  %s1614_s30 = smov 0   ;;  %s1616_s10 = smov 0  }
   0x2   :  { %s1618_s11 = smov 0   ;;  %s1620_s12 = smov 0  }
   0x3 LB: > { %s1635_s13 = sadd.s32 4294967295, %s1545_s12   ;;  %s1229_s14 = sadd.s32 4294967294, %s1545_s12   ;;  %s1545_s12 = sphi %s1620_s12, %s1879_s12   ;;  %s1541_s11 = sphi %s1618_s11, %s1878_s11   ;;  %s1537_s10 = sphi %s1616_s10, %s1877_s10   ;;  %s1533_s30 = sphi %s1614_s30, %s1876_s30  }
   0x4   : > { %s1639_s15 = sadd.s32 1, %s1545_s12   ;;  %s223_s16 = sadd.s32 1, %s1541_s11 }
   0x5   : > { %s220_s17 = ssub.s32 %s1545_s12, %s1639_s15  ;;  %p233_p0 = scmp.ne.s32.totalorder %s1541_s11, %s1537_s10 }
   0x6   : > { %p221_p1 = scmp.eq.s32.totalorder %s220_s17, 0  ;;  %p234_p2 = scmp.eq.s32.totalorder %s1635_s13, 1 }
   0x7   : > { %p239_p3 = scmp.ne.s32.totalorder %s1537_s10, %s1533_s30  ;;  %p240_p4 = scmp.eq.s32.totalorder %s1229_s14, 1 }
   0x8   : > { %s1650_s18 = scalar_select %p221_p1, %s1541_s11, %s223_s16  }
   0x9   : > { %p1652_p5 = por %p234_p2, %p233_p0  ;;  %p1656_p6 = por %p240_p4, %p239_p3 }
   0xa   : > { %p1232_p7 = scmp.ge.s32.totalorder %s1545_s12, 1  ;;  %p289_p8 = scmp.lt.s32.totalorder %s1545_s12, 3 }
   0xc   : > { %p290_p9 = pnand %p1232_p7, %p289_p8 }
   0xd   : > { %v1449_v0 = vld [vmem:[%s1865_s1] sm:$0xff] (!%p290_p9)   ;;  %v1547_v1 = vmov (!%p290_p9), 0.0   ;;  %v1450_v2 = vld [vmem:[%s1865_s1 + $0x8] sm:$0xff] (!%p290_p9)   ;;  %vm1548_vm0 = vmmov (!%p290_p9), 0   ;;  %p324_p10 = scmp.lt.s32.totalorder (!%p290_p9), %s1635_s13, 1  ;;  %vm347_vm1 = vcmask (!%p290_p9), 261120   ;;  %v394_v22 = vlaneseq (!%p290_p9) }
   0xe   : > { %293 = sbr.rel (%p290_p9) target bundleno = 2121 (0x849), region = 56  ;;  %1302 = vmatprep.subr.bf16.mxu0 (!%p290_p9), %v1547_v1  ;;  %1322 = vmatprep.subr.bf16.mxu1 (!%p290_p9), %v1547_v1  ;;  %s1549_s14 = smov (!%p290_p9), 96   ;;  %vm402_vm2 = vcmask (!%p290_p9), 64512   ;;  %vm465_vm4 = vcmask (!%p290_p9), 1043456   ;;  %vm858_vm5 = vcmask (!%p290_p9), 130048   ;;  %vm860_vm6 = vcmask (!%p290_p9), 195584  }
   0xf   : > { %1303 = vmatpush3.bf16.msra.mxu0 (!%p290_p9), %v1449_v0  ;;  %1306 = vmatprep.mubr.msk.bf16.mxu0 (!%p290_p9), %vm1548_vm0, %v1547_v1  ;;  %s1550_s16 = smov (!%p290_p9), 120   ;;  %s1551_s17 = smov (!%p290_p9), 88   ;;  %v395_v23 = vshrl.u32 (!%p290_p9), %v394_v22, 7  ;;  %v397_v24 = vand.u32 (!%p290_p9), 127, %v394_v22  ;;  %vm1154_vm7 = vcmask (!%p290_p9), 257024  }
  0x10   : > { %1304 = vmatprep.subr.bf16.mxu0 (!%p290_p9), %v1547_v1  ;;  %1324 = vmatprep.mubr.msk.bf16.mxu1 (!%p290_p9), %vm1548_vm0, %v1547_v1  ;;  %s1552_s21 = smov (!%p290_p9), 80   ;;  %s1553_s22 = smov (!%p290_p9), 112  }
  0x11   : > { %s1554_s23 = smov (!%p290_p9), 72   ;;  %s1555_s24 = smov (!%p290_p9), 104   ;;  %vm398_vm3 = vcmp.ge.s32.totalorder (!%p290_p9), %v395_v23, %v397_v24 }
  0x12   : > { %s1558_s27 = smov (!%p290_p9), 40   ;;  %s1559_s28 = smov (!%p290_p9), 48  }
  0x13   : > { %1305 = vmatpush3.bf16.msra.mxu0 (!%p290_p9), %v1450_v2 }
  0x14   : > { %1310 = vmatprep.subr.bf16.mxu0 (!%p290_p9), %v1547_v1 }
  0x15   : > { %s325_s25 = scalar_select %p324_p10, %s1635_s13, 1 }
  0x17   : > { %s1234_s26 = sshll.u32 %s325_s25, 2  ;;  %s1556_s25 = smov 56  }
  0x18   : > { %s327_s29 = scalar_lea.vmem %s1864_s0, %s1234_s26  ;;  %s1557_s26 = smov 64  }
  0x19   : > { %v1681_v3 = vld [vmem:[%s327_s29] sm:$0xf]  ;;  %s1560_s29 = smov 8  }
  0x1a   : > { %1307 = vmatmul.mubr.msk.bf16.vlgmr.msra.gmra.mrb[0].mxu0 %vm347_vm1, %v1681_v3 }
  0x1b   : > { %1312 = vmatprep.mubr.msk.bf16.mxu0 %vm1548_vm0, %v1547_v1 }
  0xed   : > { %v385_v4 = vpop.f32.mrb[0].mxu0 }
  0xee   : > { %v391_v5 = vmul.f32 0.35355338, %v385_v4  ;;  %v1687_v6 = vpack.c.bf16 %v385_v4, %v385_v4  ;;  %v1308_v7 = vpop.f32.mrb[1].mxu0 }
  0xef   : > { %v388_v8 = vpop.f32.mrb[2].mxu0 }
  0xf0   : > { %v392_v9 = vpack.c.bf16 %v391_v5, %v391_v5  ;;  %400 = vrot.lane.b32.xlu0 %v1687_v6, %s1549_s14  ;;  %v1309_v10 = vpop.f32.mrb[3].mxu0  ;;  %s1265_s14 = sshll.u32 %s1635_s13, 6  ;;  %s1563_s13 = smov [#allocation2]  }
  0xf2   : > { %512 = vrot.lane.b32.xlu1 %v392_v9, %s1550_s16 }
  0xf4   : > { %514 = vrot.lane.b32.xlu0 %v1687_v6, %s1551_s17 }
  0xf6   : > { %625 = vrot.lane.b32.xlu1 %v1687_v6, %s1552_s21 }
  0xf8   : > { %623 = vrot.lane.b32.xlu0 %v392_v9, %s1553_s22  ;;  %s1561_s22 = smov 16  }
  0xfa   : > { %736 = vrot.lane.b32.xlu1 %v1687_v6, %s1554_s23  ;;  %s1562_s23 = smov 24  }
  0xfc   : > { %734 = vrot.lane.b32.xlu0 %v392_v9, %s1555_s24  ;;  %s321_s24 = sand.u32 1, %s1537_s10  }
 0x162   : > { %v401_v11 = vpop.permute.xlu0 %400 }
 0x163   : > { %v407_v12 = vsel %vm402_vm2, %v401_v11, 0 }
 0x164   : > { %1311 = vmatpush3.bf16.xpose.msra.mxu0 %v407_v12  ;;  %v513_v13 = vpop.permute.xlu1 %512 }
 0x165   : > { %1316 = vmatprep.subr.bf16.mxu0 %v1547_v1 }
 0x166   : > { %v515_v14 = vpop.permute.xlu0 %514 }
 0x167   : > { %v520_v15 = vsel %vm402_vm2, %v515_v14, 0 }
 0x168   : > { %1323 = vmatpush3.bf16.xpose.msra.mxu1 %v520_v15  ;;  %v626_v16 = vpop.permute.xlu1 %625 }
 0x169   : > { %1334 = vmatprep.subr.bf16.mxu1 %v1547_v1  ;;  %v631_v17 = vsel %vm402_vm2, %v626_v16, 0 }
 0x16a   : > { %v624_v19 = vpop.permute.xlu0 %623 }
 0x16b   : > { %1313 = vmatmul.mubr.msk.bf16.vlgmr.msra.gmra.mrb[4].mxu0 %vm402_vm2, %v392_v9 }
 0x16c   : > { %1318 = vmatprep.mubr.msk.bf16.mxu0 %vm1548_vm0, %v1547_v1  ;;  %v737_v18 = vpop.permute.xlu1 %736 }
 0x16d   : > { %v742_v20 = vsel %vm402_vm2, %v737_v18, 0 }
 0x16e   : > { %v735_v21 = vpop.permute.xlu0 %734 }
 0x16f   : > { %1325 = vmatmul.mubr.msk.bf16.vlgmr.msra.gmra.mrb[0].mxu1 %vm402_vm2, %v513_v13 }
 0x170   : > { %1335 = vmatpush3.bf16.xpose.msra.mxu1 %v631_v17  ;;  %1336 = vmatprep.mubr.msk.bf16.mxu1 %vm1548_vm0, %v1547_v1 }
 0x171   : > { %1346 = vmatprep.subr.bf16.mxu1 %v1547_v1 }
 0x177   : > { %1337 = vmatmul.mubr.msk.bf16.vlgmr.msra.gmra.mrb[4].mxu1 %vm402_vm2, %v624_v19 }
 0x178   : > { %1347 = vmatpush3.bf16.xpose.msra.mxu1 %v742_v20  ;;  %1348 = vmatprep.mubr.msk.bf16.mxu1 %vm1548_vm0, %v1547_v1 }
 0x179   : > { %1358 = vmatprep.subr.bf16.mxu1 %v1547_v1 }
 0x17f   : > { %1349 = vmatmul.mubr.msk.bf16.vlgmr.msra.gmra.mrb[8].mxu1 %vm402_vm2, %v735_v21 }
 0x180   : > { %1362 = vmatprep.mubr.msk.bf16.mxu1 %vm1548_vm0, %v1547_v1 }
 0x23e   : > { %v443_v25 = vpop.f32.mrb[4].mxu0 }
 0x23f   : > { %v449_v26 = vsel %vm398_vm3, %v443_v25, -1e+30  ;;  %v1314_v27 = vpop.f32.mrb[5].mxu0 }
 0x240   : > { %v446_v28 = vpop.f32.mrb[6].mxu0  ;;  %v450_v29 = vsel %vm402_vm2, %v449_v26, -inf }
 0x241   : > { %451 = vmax.xlane.f32.xlu1 %v450_v29  ;;  %v1315_v30 = vpop.f32.mrb[7].mxu0 }
 0x242   : > { %v556_v31 = vpop.f32.mrb[0].mxu1 }
 0x243   : > { %v562_v32 = vsel %vm398_vm3, %v556_v31, -1e+30  ;;  %v1326_v33 = vpop.f32.mrb[1].mxu1  ;;  %v1451_v31 = vld [vmem:[%s1866_s2] sm:$0xff]  }
 0x244   : > { %v559_v34 = vpop.f32.mrb[2].mxu1  ;;  %v563_v35 = vsel %vm402_vm2, %v562_v32, -inf  ;;  %1359 = vmatpush3.bf16.msra.mxu1 %v1451_v31  ;;  %v1452_v33 = vld [vmem:[%s1866_s2 + $0x8] sm:$0xff]  }
 0x245   : > { %564 = vmax.xlane.f32.xlu0 %v563_v35  ;;  %v1327_v36 = vpop.f32.mrb[3].mxu1  ;;  %1360 = vmatprep.subr.bf16.mxu1 %v1547_v1 }
 0x248   : > { %1361 = vmatpush3.bf16.msra.mxu1 %v1452_v33 }
 0x249   : > { %1374 = vmatprep.subr.bf16.mxu1 %v1547_v1 }
 0x24a   : > { %v667_v37 = vpop.f32.mrb[4].mxu1 }
 0x24b   : > { %v673_v38 = vsel %vm398_vm3, %v667_v37, -1e+30  ;;  %v1338_v39 = vpop.f32.mrb[5].mxu1 }
 0x24c   : > { %v670_v40 = vpop.f32.mrb[6].mxu1  ;;  %v674_v41 = vsel %vm402_vm2, %v673_v38, -inf }
 0x24d   : > { %675 = vmax.xlane.f32.xlu0 %v674_v41  ;;  %v1339_v42 = vpop.f32.mrb[7].mxu1 }
 0x252   : > { %v778_v43 = vpop.f32.mrb[8].mxu1  ;;  %573 = vrot.lane.b32.xlu1 %v1687_v6, %s1556_s25  ;;  %s1233_s25 = sshll.u32 %s321_s24, 2 }
 0x253   : > { %v1350_v44 = vpop.f32.mrb[9].mxu1  ;;  %v784_v47 = vsel %vm398_vm3, %v778_v43, -1e+30  ;;  %s323_s16 = scalar_lea.vmem [#allocation2], %s1233_s25  ;;  %s1487_s25 = sshll.u32 %s1563_s13, 4  ;;  %s1488_s25 = int_to_ptr.vmem [resolvable:$false] %s1487_s25 }
 0x254   : > { %v781_v45 = vpop.f32.mrb[10].mxu1  ;;  %v785_v48 = vsel %vm402_vm2, %v784_v47, -inf  ;;  %s1170_s17 = sshll.u32 %s323_s16, 4  ;;  %s1824_s17 = int_to_ptr.vmem [resolvable:$true] %s1170_s17 }
 0x255   : > { %v1351_v46 = vpop.f32.mrb[11].mxu1  ;;  %p1490_p0 = scmp.lt.s32.totalorder %s1824_s17, %s1488_s25 }
 0x263   : > { %460 = vrot.lane.b32.xlu0 %v1687_v6, %s1557_s26  ;;  %s1157_s26 = scalar_lea.sflag [#allocation3], %s321_s24 }
 0x267   : > { %795 = vrot.lane.b32.xlu0 %v1687_v6, %s1558_s27  ;;  %s1483_s27 = scalar_lea.vmem %s1824_s17, 64 }
 0x268   : > { %p1484_p11 = scmp.ne.s32.totalorder %s1824_s17, %s1483_s27 }
 0x26a   : > { %p1485_p12 = pnand %p1484_p11, %p1652_p5 }
 0x26c   : > { %p1486_p13 = pneg %p1485_p12 }
 0x276   : > { %786 = vmax.xlane.f32.xlu1 %v785_v48 }
 0x287   : > { %684 = vrot.lane.b32.xlu1 %v1687_v6, %s1559_s28  ;;  %s1489_s28 = scalar_lea.vmem %s1488_s25, 128 }
 0x288   : > { %p1491_p1 = scmp.lt.s32.totalorder %s1489_s28, %s1483_s27 }
 0x28a   : > { %p1492_p2 = por %p1491_p1, %p1490_p0 }
 0x28c   : > { %p1493_p3 = pnand %p1492_p2, %p1486_p13 }
 0x2ce   : > { %v452_v49 = vpop.xlane.xlu1 %451 }
 0x2cf   : > { %v453_v50 = vsub.f32 %v449_v26, %v452_v49 }
 0x2d1   : > { %v454_v51 = vmul.f32 1.442695, %v453_v50 }
 0x2d2   : > { %v565_v52 = vpop.xlane.xlu0 %564  ;;  %v574_v61 = vpop.permute.xlu1 %573 }
 0x2d3   : > { %v566_v53 = vsub.f32 %v562_v32, %v565_v52  ;;  %1463 = vpow2.f32 %v454_v51  ;;  %v579_v2 = vsel %vm465_vm4, %v574_v61, 0 }
 0x2d5   : > { %v567_v54 = vmul.f32 1.442695, %v566_v53 }
 0x2d7   : > { %1465 = vpow2.f32 %v567_v54 }
 0x2da   : > { %v676_v55 = vpop.xlane.xlu0 %675 }
 0x2db   : > { %v677_v56 = vsub.f32 %v673_v38, %v676_v55 }
 0x2dd   : > { %v678_v57 = vmul.f32 1.442695, %v677_v56  ;;  %v1464_v58 = vpop.eup %1463  ;;  %v330_v56 = vunpack.c.l.bf16 %v1681_v3  ;;  %v1454_v3 = vld [vmem:[%s1869_s5 + $0x8] sm:$0xff]  }
 0x2de   : > { %v461_v59 = vpop.permute.xlu0 %460  ;;  %v459_v63 = vpack.c.bf16 %v1464_v58, %v1464_v58  ;;  %v456_v4 = vsel %vm402_vm2, %v1464_v58, 0.0 }
 0x2df   : > { %1467 = vpow2.f32 %v678_v57  ;;  %v467_v60 = vsel %vm465_vm4, %v461_v59, 0 }
 0x2e0   : > { %1317 = vmatpush3.bf16.msra.mxu0 %v467_v60 }
 0x2e1   : > { %v1466_v62 = vpop.eup %1465  ;;  %1328 = vmatprep.subr.bf16.mxu0 %v1547_v1 }
 0x2e2   : > { %v569_v0 = vsel %vm402_vm2, %v1466_v62, 0.0  ;;  %v572_v6 = vpack.c.bf16 %v1466_v62, %v1466_v62  ;;  %v796_v13 = vpop.permute.xlu0 %795 }
 0x2e3   : > { %570 = vadd.xlane.f32.xlu1 %v569_v0  ;;  %1319 = vmatmul.mubr.msk.bf16.vlgmr.msra.gmra.mrb[8].mxu0 %vm402_vm2, %v459_v63  ;;  %v801_v15 = vsel %vm465_vm4, %v796_v13, 0 }
 0x2e4   : > { %1329 = vmatpush3.bf16.msra.mxu0 %v579_v2  ;;  %1330 = vmatprep.mubr.msk.bf16.mxu0 %vm1548_vm0, %v1547_v1  ;;  %v1453_v2 = vld [vmem:[%s1869_s5] sm:$0xff]  }
 0x2e5   : > { %1340 = vmatprep.subr.bf16.mxu0 %v1547_v1 }
 0x2e7   : > { %457 = vadd.xlane.f32.xlu1 %v456_v4  ;;  %v1455_v4 = vld [vmem:[%s1870_s6] sm:$0xff]  }
 0x2e9   : > { %v1468_v5 = vpop.eup %1467 }
 0x2ea   : > { %v680_v7 = vsel %vm402_vm2, %v1468_v5, 0.0  ;;  %v683_v14 = vpack.c.bf16 %v1468_v5, %v1468_v5  ;;  %v1456_v5 = vld [vmem:[%s1870_s6 + $0x8] sm:$0xff]  }
 0x2eb   : > { %681 = vadd.xlane.f32.xlu0 %v680_v7  ;;  %1331 = vmatmul.mubr.msk.bf16.vlgmr.msra.gmra.mrb[12].mxu0 %vm402_vm2, %v572_v6  ;;  %v1457_v6 = vld [vmem:[%s1870_s6 + $0x10] sm:$0xff]   ;;  %v1458_v7 = vld [vmem:[%s1870_s6 + $0x18] sm:$0xff]  }
 0x2ec   : > { %1342 = vmatprep.mubr.msk.bf16.mxu0 %vm1548_vm0, %v1547_v1 }
 0x303   : > { %v787_v8 = vpop.xlane.xlu1 %786 }
 0x304   : > { %v788_v9 = vsub.f32 %v784_v47, %v787_v8  ;;  %v1459_v8 = vld [vmem:[%s1870_s6 + $0x20] sm:$0xff]  }
 0x306   : > { %v789_v10 = vmul.f32 1.442695, %v788_v9  ;;  %v1460_v9 = vld [vmem:[%s1870_s6 + $0x28] sm:$0xff]  }
 0x307   : > { %v685_v11 = vpop.permute.xlu1 %684 }
 0x308   : > { %1469 = vpow2.f32 %v789_v10  ;;  %v690_v12 = vsel %vm465_vm4, %v685_v11, 0  ;;  %v1461_v10 = vld [vmem:[%s1870_s6 + $0x30] sm:$0xff]  }
 0x309   : > { %1341 = vmatpush3.bf16.msra.mxu0 %v690_v12 }
 0x30a   : > { %1352 = vmatprep.subr.bf16.mxu0 %v1547_v1 }
 0x30c   : > { %1343 = vmatmul.mubr.msk.bf16.vlgmr.msra.gmra.mrb[16].mxu0 %vm402_vm2, %v683_v14 }
 0x30d   : > { %1353 = vmatpush3.bf16.msra.mxu0 %v801_v15  ;;  %1354 = vmatprep.mubr.msk.bf16.mxu0 %vm1548_vm0, %v1547_v1 }
 0x30e   : > { %1366 = vmatprep.subr.bf16.mxu0 %v1547_v1 }
 0x312   : > { %v1470_v16 = vpop.eup %1469 }
 0x313   : > { %v791_v17 = vsel %vm402_vm2, %v1470_v16, 0.0  ;;  %v794_v18 = vpack.c.bf16 %v1470_v16, %v1470_v16 }
 0x314   : > { %792 = vadd.xlane.f32.xlu0 %v791_v17 }
 0x315   : > { %1355 = vmatmul.mubr.msk.bf16.vlgmr.msra.gmra.mrb[20].mxu0 %vm402_vm2, %v794_v18 }
 0x316   : > { %1370 = vmatprep.mubr.msk.bf16.mxu0 %vm1548_vm0, %v1547_v1  ;;  %1367 = vmatpush3.bf16.msra.mxu0 %v1453_v2 }
 0x317   : > { %1368 = vmatprep.subr.bf16.mxu0 %v1547_v1 }
 0x31a   : > { %1369 = vmatpush3.bf16.msra.mxu0 %v1454_v3 }
 0x370   : > { %v571_v19 = vpop.xlane.xlu1 %570 }
 0x371   : > { %1471 = vrcp.f32 %v571_v19 }
 0x374   : > { %v458_v46 = vpop.xlane.xlu1 %457 }
 0x378   : > { %v682_v30 = vpop.xlane.xlu0 %681 }
 0x379   : > { %1473 = vrcp.f32 %v682_v30 }
 0x37b   : > { %v1472_v24 = vpop.eup %1471 }
 0x383   : > { %v1474_v34 = vpop.eup %1473 }
 0x3a1   : > { %v793_v32 = vpop.xlane.xlu0 %792 }
 0x3a2   : > { %1475 = vrcp.f32 %v793_v32 }
 0x3a3   : > { %1477 = vrcp.f32 %v458_v46 }
 0x3ac   : > { %v1476_v40 = vpop.eup %1475 }
 0x3ad   : > { %v1478_v47 = vpop.eup %1477 }
 0x3b6   : > { %v503_v20 = vpop.f32.mrb[8].mxu0 }
 0x3b7   : > { %v1320_v21 = vpop.f32.mrb[9].mxu0  ;;  %v510_v50 = vmul.f32 %v1478_v47, %v503_v20  ;;  %v1249_v20 = vld [vmem:[%s1867_s3] ss:$0 sm:$0xff] }
 0x3b8   : > { %v506_v22 = vpop.f32.mrb[10].mxu0 }
 0x3b9   : > { %v1321_v23 = vpop.f32.mrb[11].mxu0  ;;  %v1250_v22 = vld [vmem:[%s1868_s4] ss:$0 sm:$0xff] }
 0x3be   : > { %v615_v25 = vpop.f32.mrb[12].mxu0 }
 0x3bf   : > { %v622_v26 = vmul.f32 %v1472_v24, %v615_v25  ;;  %v1332_v27 = vpop.f32.mrb[13].mxu0  ;;  %v1462_v25 = vld [vmem:[%s1870_s6 + $0x38] sm:$0xff]  }
 0x3c0   : > { %v618_v28 = vpop.f32.mrb[14].mxu0 }
 0x3c1   : > { %846 = vrot.lane.b32.xlu0 %v622_v26, %s1560_s29  ;;  %v1333_v29 = vpop.f32.mrb[15].mxu0 }
 0x3df   : > { %v726_v35 = vpop.f32.mrb[16].mxu0 }
 0x3e0   : > { %v733_v36 = vmul.f32 %v1474_v34, %v726_v35  ;;  %v1344_v37 = vpop.f32.mrb[17].mxu0 }
 0x3e1   : > { %v729_v38 = vpop.f32.mrb[18].mxu0 }
 0x3e2   : > { %850 = vrot.lane.b32.xlu1 %v733_v36, %s1561_s22  ;;  %v1345_v39 = vpop.f32.mrb[19].mxu0 }
 0x3e8   : > { %v837_v41 = vpop.f32.mrb[20].mxu0 }
 0x3e9   : > { %v844_v42 = vmul.f32 %v1476_v40, %v837_v41  ;;  %v1356_v43 = vpop.f32.mrb[21].mxu0 }
 0x3ea   : > { %v840_v44 = vpop.f32.mrb[22].mxu0 }
 0x3eb   : > { %854 = vrot.lane.b32.xlu1 %v844_v42, %s1562_s23  ;;  %v1357_v45 = vpop.f32.mrb[23].mxu0  ;;  %s1822_s23 = scalar_lea.hbm %s1873_s9, %s1265_s14 }
 0x433   : > { %v847_v48 = vpop.permute.xlu0 %846 }
 0x434   : > { %v857_v51 = vsel %vm402_vm2, %v510_v50, %v847_v48 }
 0x454   : > { %v851_v49 = vpop.permute.xlu1 %850 }
 0x455   : > { %v859_v52 = vsel %vm858_vm5, %v857_v51, %v851_v49  ;;  %v1262_v49 = vld [vmem:[%s1871_s7] ss:$0 sm:$0xff] }
 0x456   : > { %v1263_v51 = vld [vmem:[%s1872_s8] ss:$0 sm:$0xff] }
 0x45d   : > { %v855_v53 = vpop.permute.xlu1 %854 }
 0x45e   : > { %v861_v54 = vsel %vm860_vm6, %v859_v52, %v855_v53 }
 0x45f   : > { %v862_v55 = vpack.c.bf16 %v861_v54, %v861_v54 }
 0x461   : > { %1363 = vmatmul.mubr.msk.bf16.vlgmr.msra.gmra.mrb[12].mxu1 %vm347_vm1, %v862_v55 }
 0x462   : > { %1390 = vmatprep.mubr.msk.bf16.mxu1 %vm1548_vm0, %v1547_v1  ;;  %1375 = vmatpush3.bf16.msra.mxu1 %v1455_v4 }
 0x463   : > { %1376 = vmatprep.subr.bf16.mxu1 %v1547_v1 }
 0x466   : > { %1377 = vmatpush3.bf16.msra.mxu1 %v1456_v5 }
 0x467   : > { %1378 = vmatprep.subr.bf16.mxu1 %v1547_v1 }
 0x46a   : > { %1379 = vmatpush3.bf16.msra.mxu1 %v1457_v6 }
 0x46b   : > { %1380 = vmatprep.subr.bf16.mxu1 %v1547_v1 }
 0x46e   : > { %1381 = vmatpush3.bf16.msra.mxu1 %v1458_v7 }
 0x46f   : > { %1382 = vmatprep.subr.bf16.mxu1 %v1547_v1 }
 0x472   : > { %1383 = vmatpush3.bf16.msra.mxu1 %v1459_v8 }
 0x473   : > { %1384 = vmatprep.subr.bf16.mxu1 %v1547_v1 }
 0x476   : > { %1385 = vmatpush3.bf16.msra.mxu1 %v1460_v9 }
 0x477   : > { %1386 = vmatprep.subr.bf16.mxu1 %v1547_v1 }
 0x47a   : > { %1387 = vmatpush3.bf16.msra.mxu1 %v1461_v10 }
 0x47b   : > { %1388 = vmatprep.subr.bf16.mxu1 %v1547_v1 }
 0x47e   : > { %1389 = vmatpush3.bf16.msra.mxu1 %v1462_v25 }
 0x534   : > { %v916_v57 = vpop.f32.mrb[12].mxu1 }
 0x535   : > { %v922_v58 = vadd.f32 %v916_v57, %v330_v56  ;;  %v1364_v59 = vpop.f32.mrb[13].mxu1 }
 0x536   : > { %v919_v60 = vpop.f32.mrb[14].mxu1 }
 0x537   : > { %v1365_v61 = vpop.f32.mrb[15].mxu1  ;;  %v923_v62 = vsel %vm347_vm1, %v922_v58, 0.0  ;;  %v928_v63 = vmul.f32 %v922_v58, %v922_v58 }
 0x538   : > { %924 = vadd.xlane.f32.xlu0 %v923_v62 }
 0x539   : > { %v929_v0 = vsel %vm347_vm1, %v928_v63, 0.0 }
 0x53a   : > { %930 = vadd.xlane.f32.xlu1 %v929_v0 }
 0x5c5   : > { %v925_v11 = vpop.xlane.xlu0 %924 }
 0x5c6   : > { %v927_v12 = vmul.f32 0.03125, %v925_v11 }
 0x5c7   : > { %v931_v13 = vpop.xlane.xlu1 %930 }
 0x5c8   : > { %v933_v14 = vmul.f32 %v927_v12, %v927_v12  ;;  %v932_v15 = vmul.f32 0.03125, %v931_v13  ;;  %v935_v18 = vsub.f32 %v922_v58, %v927_v12 }
 0x5ca   : > { %v934_v16 = vsub.f32 %v932_v15, %v933_v14 }
 0x5cc   : > { %v936_v17 = vadd.f32 1e-05, %v934_v16 }
 0x5ce   : > { %1479 = vrsqrt.f32 %v936_v17 }
 0x5d8   : > { %v1480_v19 = vpop.eup %1479 }
 0x5d9   : > { %v938_v21 = vmul.f32 %v1480_v19, %v935_v18 }
 0x5db   : > { %v946_v1 = vmul.f32 %v1249_v20, %v938_v21 }
 0x5dd   : > { %v954_v23 = vadd.f32 %v1250_v22, %v946_v1 }
 0x5df   : > { %v955_v24 = vpack.c.bf16 %v954_v23, %v954_v23 }
 0x5e1   : > { %1371 = vmatmul.mubr.msk.bf16.vlgmr.msra.gmra.mrb[24].mxu0 %vm347_vm1, %v955_v24 }
 0x6b4   : > { %v1009_v26 = vpop.f32.mrb[24].mxu0 }
 0x6b5   : > { %v1015_v27 = vmax.f32 %v1009_v26, 0.0  ;;  %v1372_v28 = vpop.f32.mrb[25].mxu0 }
 0x6b6   : > { %v1012_v29 = vpop.f32.mrb[26].mxu0 }
 0x6b7   : > { %v1016_v30 = vpack.c.bf16 %v1015_v27, %v1015_v27  ;;  %v1373_v31 = vpop.f32.mrb[27].mxu0 }
 0x6b9   : > { %1391 = vmatmul.mubr.bf16.vlgmr.msra.gmra.mrb[16].mxu1 %v1016_v30 }
 0x78c   : > { %v1115_v32 = vpop.f32.mrb[16].mxu1 }
 0x78d   : > { %v1121_v33 = vadd.f32 %v1115_v32, %v954_v23  ;;  %v1392_v34 = vpop.f32.mrb[17].mxu1 }
 0x78e   : > { %v1118_v35 = vpop.f32.mrb[18].mxu1 }
 0x78f   : > { %v1393_v36 = vpop.f32.mrb[19].mxu1  ;;  %v1122_v37 = vsel %vm347_vm1, %v1121_v33, 0.0  ;;  %v1126_v38 = vmul.f32 %v1121_v33, %v1121_v33 }
 0x790   : > { %1123 = vadd.xlane.f32.xlu0 %v1122_v37 }
 0x791   : > { %v1127_v39 = vsel %vm347_vm1, %v1126_v38, 0.0 }
 0x794   : > { %1128 = vadd.xlane.f32.xlu0 %v1127_v39 }
 0x81d   : > { %v1124_v40 = vpop.xlane.xlu0 %1123 }
 0x81e   : > { %v1125_v41 = vmul.f32 0.03125, %v1124_v40 }
 0x820   : > { %v1131_v43 = vmul.f32 %v1125_v41, %v1125_v41  ;;  %v1133_v47 = vsub.f32 %v1121_v33, %v1125_v41 }
 0x821   : > { %v1129_v42 = vpop.xlane.xlu0 %1128 }
 0x822   : > { %v1130_v44 = vmul.f32 0.03125, %v1129_v42 }
 0x824   : > { %v1132_v45 = vsub.f32 %v1130_v44, %v1131_v43 }
 0x826   : > { %v1134_v46 = vadd.f32 1e-05, %v1132_v45 }
 0x828   : > { %1481 = vrsqrt.f32 %v1134_v46 }
 0x832   : > { %v1482_v48 = vpop.eup %1481 }
 0x833   : > { %v1136_v50 = vmul.f32 %v1482_v48, %v1133_v47 }
 0x835   : > { %v1144_v52 = vmul.f32 %v1262_v49, %v1136_v50 }
 0x837   : > { %v1152_v53 = vadd.f32 %v1263_v51, %v1144_v52 }
 0x839   : > { %v1153_v54 = vpack.c.bf16 %v1152_v53, %v1152_v53 }
 0x83b   : > { %1155 = vst.msk [vmem:[%s323_s16] sm:$0xf] %vm1154_vm7, %v1153_v54 }
 0x83c   : > { %1496 = shalt.err (!%p1493_p3)
}
 0x83d   : > { %s1497_s24 = scalar_lea.hbm %s1822_s23, 64  ;;  %s1501_s16 = scalar_lea.hbm %s1873_s9, 128 }
 0x83e   : > { %p1498_p4 = scmp.ne.s32.totalorder %s1822_s23, %s1497_s24  ;;  %p1502_p9 = scmp.lt.u32.totalorder %s1822_s23, %s1873_s9 }
 0x83f   : > { %p1503_p10 = scmp.lt.u32.totalorder %s1501_s16, %s1497_s24  ;;  %p1505_p12 = scmp.lt.u32.totalorder %s1497_s24, %s1822_s23 }
 0x840   : > { %p1499_p7 = pnand %p1498_p4, %p1652_p5 }
 0x841   : > { %p1504_p11 = por %p1503_p10, %p1502_p9 }
 0x842   : > { %p1500_p8 = pneg %p1499_p7 }
 0x843   : > { %p1506_p13 = por %p1505_p12, %p1504_p11 }
 0x845   : > { %p1507_p0 = pnand %p1506_p13, %p1500_p8 }
 0x847   : > { %1510 = shalt.err (!%p1507_p0)
}
 0x848   : > { %1394 = dma.vmem_to_hbm [thread:$0]  (%p1652_p5), %s1824_s17, 64, %s1822_s23, %s1157_s26  }
 0x849 PF: > { %p1400_p1 = scmp.ge.s32.totalorder %s1545_s12, 2  ;;  %s1182_s27 = sand.u32 1, %s1533_s30  }
 0x84a   : > { %s1183_s13 = scalar_lea.sflag [#allocation3], %s1182_s27 }
 0x84b   : > { %p1397_p2 = pnand %p1400_p1, %p1656_p6 }
 0x84d   : > { %1528 = dma.done.wait (!%p1397_p2), %s1183_s13, 64  }
 0x84e   : > { %1530 = vsyncadd (!%p1397_p2), %s1183_s13, 4294967232  ;;  %p19_p3 = scmp.ge.s32.totalorder %s1639_s15, 4   ;;  %s1876_s30 = smov %s1537_s10 }
 0x84f   : > { %s1877_s10 = smov %s1541_s11  ;;  %s1878_s11 = smov %s1650_s18 }
 0x850   : > { %s1879_s12 = smov %s1639_s15  ;;  %21 = sbr.rel (!%p19_p3) target bundleno = 3 (0x3), region = 91 }
 0x857   :  { %1188 = vsyncpa [#allocation3], 1 }
 0x858   :  { %1190 = vsyncpa [#allocation3 + $0x1], 1 }

// kernel: tpu_custom_call.1
= control target key start
LH: loop header
LB: loop body
LE: loop exit
PB: predicated region body
PF: predicated region fallthrough
CT: control target
= control target key end

     0   :  { %14 = vsyncpa [#allocation3], 0  ;;  %s1864_s0 = inlined_call_operand.vmem [shape: bf16[2,8,32], index: 0, kind: input, shape index: {}]   ;;  %s1865_s1 = inlined_call_operand.vmem [shape: bf16[32,96], index: 1, kind: input, shape index: {}]   ;;  %s1866_s2 = inlined_call_operand.vmem [shape: bf16[32,32], index: 2, kind: input, shape index: {}]   ;;  %s1867_s3 = inlined_call_operand.vmem [shape: f32[1,32], index: 3, kind: input, shape index: {}]   ;;  %s1868_s4 = inlined_call_operand.vmem [shape: f32[1,32], index: 4, kind: input, shape index: {}]   ;;  %s1869_s5 = inlined_call_operand.vmem [shape: bf16[32,128], index: 5, kind: input, shape index: {}]   ;;  %s1870_s6 = inlined_call_operand.vmem [shape: bf16[128,32], index: 6, kind: input, shape index: {}]   ;;  %s1871_s7 = inlined_call_operand.vmem [shape: f32[1,32], index: 7, kind: input, shape index: {}]   ;;  %s1872_s8 = inlined_call_operand.vmem [shape: f32[1,32], index: 8, kind: input, shape index: {}]   ;;  %s1873_s9 = inlined_call_operand.hbm [shape: bf16[2,8,32], index: 9, kind: output, shape index: {}]  }
   0x1   :  { %16 = vsyncpa [#allocation3 + $0x1], 0  ;;  %s1614_s30 = smov 0   ;;  %s1616_s10 = smov 0  }
   0x2   :  { %s1618_s11 = smov 0   ;;  %s1620_s12 = smov 0  }
   0x3 LB: > { %s1635_s13 = sadd.s32 4294967295, %s1545_s12   ;;  %s1229_s14 = sadd.s32 4294967294, %s1545_s12   ;;  %s1545_s12 = sphi %s1620_s12, %s1879_s12   ;;  %s1541_s11 = sphi %s1618_s11, %s1878_s11   ;;  %s1537_s10 = sphi %s1616_s10, %s1877_s10   ;;  %s1533_s30 = sphi %s1614_s30, %s1876_s30  }
   0x4   : > { %s1639_s15 = sadd.s32 1, %s1545_s12   ;;  %s223_s16 = sadd.s32 1, %s1541_s11 }
   0x5   : > { %s220_s17 = ssub.s32 %s1545_s12, %s1639_s15  ;;  %p233_p0 = scmp.ne.s32.totalorder %s1541_s11, %s1537_s10 }
   0x6   : > { %p221_p1 = scmp.eq.s32.totalorder %s220_s17, 0  ;;  %p234_p2 = scmp.eq.s32.totalorder %s1635_s13, 1 }
   0x7   : > { %p239_p3 = scmp.ne.s32.totalorder %s1537_s10, %s1533_s30  ;;  %p240_p4 = scmp.eq.s32.totalorder %s1229_s14, 1 }
   0x8   : > { %s1650_s18 = scalar_select %p221_p1, %s1541_s11, %s223_s16  }
   0x9   : > { %p1652_p5 = por %p234_p2, %p233_p0  ;;  %p1656_p6 = por %p240_p4, %p239_p3 }
   0xa   : > { %p1232_p7 = scmp.ge.s32.totalorder %s1545_s12, 1  ;;  %p289_p8 = scmp.lt.s32.totalorder %s1545_s12, 3 }
   0xc   : > { %p290_p9 = pnand %p1232_p7, %p289_p8 }
   0xd   : > { %v1449_v0 = vld [vmem:[%s1865_s1] sm:$0xff] (!%p290_p9)   ;;  %v1547_v1 = vmov (!%p290_p9), 0.0   ;;  %v1450_v2 = vld [vmem:[%s1865_s1 + $0x8] sm:$0xff] (!%p290_p9)   ;;  %vm1548_vm0 = vmmov (!%p290_p9), 0   ;;  %p324_p10 = scmp.lt.s32.totalorder (!%p290_p9), %s1635_s13, 1  ;;  %vm347_vm1 = vcmask (!%p290_p9), 261120   ;;  %v394_v22 = vlaneseq (!%p290_p9) }
   0xe   : > { %293 = sbr.rel (%p290_p9) target bundleno = 2121 (0x849), region = 56  ;;  %1302 = vmatprep.subr.bf16.mxu0 (!%p290_p9), %v1547_v1  ;;  %1322 = vmatprep.subr.bf16.mxu1 (!%p290_p9), %v1547_v1  ;;  %s1549_s14 = smov (!%p290_p9), 96   ;;  %vm402_vm2 = vcmask (!%p290_p9), 64512   ;;  %vm465_vm4 = vcmask (!%p290_p9), 1043456   ;;  %vm858_vm5 = vcmask (!%p290_p9), 130048   ;;  %vm860_vm6 = vcmask (!%p290_p9), 195584  }
   0xf   : > { %1303 = vmatpush3.bf16.msra.mxu0 (!%p290_p9), %v1449_v0  ;;  %1306 = vmatprep.mubr.msk.bf16.mxu0 (!%p290_p9), %vm1548_vm0, %v1547_v1  ;;  %s1550_s16 = smov (!%p290_p9), 120   ;;  %s1551_s17 = smov (!%p290_p9), 88   ;;  %v395_v23 = vshrl.u32 (!%p290_p9), %v394_v22, 7  ;;  %v397_v24 = vand.u32 (!%p290_p9), 127, %v394_v22  ;;  %vm1154_vm7 = vcmask (!%p290_p9), 257024  }
  0x10   : > { %1304 = vmatprep.subr.bf16.mxu0 (!%p290_p9), %v1547_v1  ;;  %1324 = vmatprep.mubr.msk.bf16.mxu1 (!%p290_p9), %vm1548_vm0, %v1547_v1  ;;  %s1552_s21 = smov (!%p290_p9), 80   ;;  %s1553_s22 = smov (!%p290_p9), 112  }
  0x11   : > { %s1554_s23 = smov (!%p290_p9), 72   ;;  %s1555_s24 = smov (!%p290_p9), 104   ;;  %vm398_vm3 = vcmp.ge.s32.totalorder (!%p290_p9), %v395_v23, %v397_v24 }
  0x12   : > { %s1558_s27 = smov (!%p290_p9), 40   ;;  %s1559_s28 = smov (!%p290_p9), 48  }
  0x13   : > { %1305 = vmatpush3.bf16.msra.mxu0 (!%p290_p9), %v1450_v2 }
  0x14   : > { %1310 = vmatprep.subr.bf16.mxu0 (!%p290_p9), %v1547_v1 }
  0x15   : > { %s325_s25 = scalar_select %p324_p10, %s1635_s13, 1 }
  0x17   : > { %s1234_s26 = sshll.u32 %s325_s25, 2  ;;  %s1556_s25 = smov 56  }
  0x18   : > { %s327_s29 = scalar_lea.vmem %s1864_s0, %s1234_s26  ;;  %s1557_s26 = smov 64  }
  0x19   : > { %v1681_v3 = vld [vmem:[%s327_s29] sm:$0xf]  ;;  %s1560_s29 = smov 8  }
  0x1a   : > { %1307 = vmatmul.mubr.msk.bf16.vlgmr.msra.gmra.mrb[0].mxu0 %vm347_vm1, %v1681_v3 }
  0x1b   : > { %1312 = vmatprep.mubr.msk.bf16.mxu0 %vm1548_vm0, %v1547_v1 }
  0xed   : > { %v385_v4 = vpop.f32.mrb[0].mxu0 }
  0xee   : > { %v391_v5 = vmul.f32 0.35355338, %v385_v4  ;;  %v1687_v6 = vpack.c.bf16 %v385_v4, %v385_v4  ;;  %v1308_v7 = vpop.f32.mrb[1].mxu0 }
  0xef   : > { %v388_v8 = vpop.f32.mrb[2].mxu0 }
  0xf0   : > { %v392_v9 = vpack.c.bf16 %v391_v5, %v391_v5  ;;  %400 = vrot.lane.b32.xlu0 %v1687_v6, %s1549_s14  ;;  %v1309_v10 = vpop.f32.mrb[3].mxu0  ;;  %s1265_s14 = sshll.u32 %s1635_s13, 6  ;;  %s1563_s13 = smov [#allocation2]  }
  0xf2   : > { %512 = vrot.lane.b32.xlu1 %v392_v9, %s1550_s16 }
  0xf4   : > { %514 = vrot.lane.b32.xlu0 %v1687_v6, %s1551_s17 }
  0xf6   : > { %625 = vrot.lane.b32.xlu1 %v1687_v6, %s1552_s21 }
  0xf8   : > { %623 = vrot.lane.b32.xlu0 %v392_v9, %s1553_s22  ;;  %s1561_s22 = smov 16  }
  0xfa   : > { %736 = vrot.lane.b32.xlu1 %v1687_v6, %s1554_s23  ;;  %s1562_s23 = smov 24  }
  0xfc   : > { %734 = vrot.lane.b32.xlu0 %v392_v9, %s1555_s24  ;;  %s321_s24 = sand.u32 1, %s1537_s10  }
 0x162   : > { %v401_v11 = vpop.permute.xlu0 %400 }
 0x163   : > { %v407_v12 = vsel %vm402_vm2, %v401_v11, 0 }
 0x164   : > { %1311 = vmatpush3.bf16.xpose.msra.mxu0 %v407_v12  ;;  %v513_v13 = vpop.permute.xlu1 %512 }
 0x165   : > { %1316 = vmatprep.subr.bf16.mxu0 %v1547_v1 }
 0x166   : > { %v515_v14 = vpop.permute.xlu0 %514 }
 0x167   : > { %v520_v15 = vsel %vm402_vm2, %v515_v14, 0 }
 0x168   : > { %1323 = vmatpush3.bf16.xpose.msra.mxu1 %v520_v15  ;;  %v626_v16 = vpop.permute.xlu1 %625 }
 0x169   : > { %1334 = vmatprep.subr.bf16.mxu1 %v1547_v1  ;;  %v631_v17 = vsel %vm402_vm2, %v626_v16, 0 }
 0x16a   : > { %v624_v19 = vpop.permute.xlu0 %623 }
 0x16b   : > { %1313 = vmatmul.mubr.msk.bf16.vlgmr.msra.gmra.mrb[4].mxu0 %vm402_vm2, %v392_v9 }
 0x16c   : > { %1318 = vmatprep.mubr.msk.bf16.mxu0 %vm1548_vm0, %v1547_v1  ;;  %v737_v18 = vpop.permute.xlu1 %736 }
 0x16d   : > { %v742_v20 = vsel %vm402_vm2, %v737_v18, 0 }
 0x16e   : > { %v735_v21 = vpop.permute.xlu0 %734 }
 0x16f   : > { %1325 = vmatmul.mubr.msk.bf16.vlgmr.msra.gmra.mrb[0].mxu1 %vm402_vm2, %v513_v13 }
 0x170   : > { %1335 = vmatpush3.bf16.xpose.msra.mxu1 %v631_v17  ;;  %1336 = vmatprep.mubr.msk.bf16.mxu1 %vm1548_vm0, %v1547_v1 }
 0x171   : > { %1346 = vmatprep.subr.bf16.mxu1 %v1547_v1 }
 0x177   : > { %1337 = vmatmul.mubr.msk.bf16.vlgmr.msra.gmra.mrb[4].mxu1 %vm402_vm2, %v624_v19 }
 0x178   : > { %1347 = vmatpush3.bf16.xpose.msra.mxu1 %v742_v20  ;;  %1348 = vmatprep.mubr.msk.bf16.mxu1 %vm1548_vm0, %v1547_v1 }
 0x179   : > { %1358 = vmatprep.subr.bf16.mxu1 %v1547_v1 }
 0x17f   : > { %1349 = vmatmul.mubr.msk.bf16.vlgmr.msra.gmra.mrb[8].mxu1 %vm402_vm2, %v735_v21 }
 0x180   : > { %1362 = vmatprep.mubr.msk.bf16.mxu1 %vm1548_vm0, %v1547_v1 }
 0x23e   : > { %v443_v25 = vpop.f32.mrb[4].mxu0 }
 0x23f   : > { %v449_v26 = vsel %vm398_vm3, %v443_v25, -1e+30  ;;  %v1314_v27 = vpop.f32.mrb[5].mxu0 }
 0x240   : > { %v446_v28 = vpop.f32.mrb[6].mxu0  ;;  %v450_v29 = vsel %vm402_vm2, %v449_v26, -inf }
 0x241   : > { %451 = vmax.xlane.f32.xlu1 %v450_v29  ;;  %v1315_v30 = vpop.f32.mrb[7].mxu0 }
 0x242   : > { %v556_v31 = vpop.f32.mrb[0].mxu1 }
 0x243   : > { %v562_v32 = vsel %vm398_vm3, %v556_v31, -1e+30  ;;  %v1326_v33 = vpop.f32.mrb[1].mxu1  ;;  %v1451_v31 = vld [vmem:[%s1866_s2] sm:$0xff]  }
 0x244   : > { %v559_v34 = vpop.f32.mrb[2].mxu1  ;;  %v563_v35 = vsel %vm402_vm2, %v562_v32, -inf  ;;  %1359 = vmatpush3.bf16.msra.mxu1 %v1451_v31  ;;  %v1452_v33 = vld [vmem:[%s1866_s2 + $0x8] sm:$0xff]  }
 0x245   : > { %564 = vmax.xlane.f32.xlu0 %v563_v35  ;;  %v1327_v36 = vpop.f32.mrb[3].mxu1  ;;  %1360 = vmatprep.subr.bf16.mxu1 %v1547_v1 }
 0x248   : > { %1361 = vmatpush3.bf16.msra.mxu1 %v1452_v33 }
 0x249   : > { %1374 = vmatprep.subr.bf16.mxu1 %v1547_v1 }
 0x24a   : > { %v667_v37 = vpop.f32.mrb[4].mxu1 }
 0x24b   : > { %v673_v38 = vsel %vm398_vm3, %v667_v37, -1e+30  ;;  %v1338_v39 = vpop.f32.mrb[5].mxu1 }
 0x24c   : > { %v670_v40 = vpop.f32.mrb[6].mxu1  ;;  %v674_v41 = vsel %vm402_vm2, %v673_v38, -inf }
 0x24d   : > { %675 = vmax.xlane.f32.xlu0 %v674_v41  ;;  %v1339_v42 = vpop.f32.mrb[7].mxu1 }
 0x252   : > { %v778_v43 = vpop.f32.mrb[8].mxu1  ;;  %573 = vrot.lane.b32.xlu1 %v1687_v6, %s1556_s25  ;;  %s1233_s25 = sshll.u32 %s321_s24, 2 }
 0x253   : > { %v1350_v44 = vpop.f32.mrb[9].mxu1  ;;  %v784_v47 = vsel %vm398_vm3, %v778_v43, -1e+30  ;;  %s323_s16 = scalar_lea.vmem [#allocation2], %s1233_s25  ;;  %s1487_s25 = sshll.u32 %s1563_s13, 4  ;;  %s1488_s25 = int_to_ptr.vmem [resolvable:$false] %s1487_s25 }
 0x254   : > { %v781_v45 = vpop.f32.mrb[10].mxu1  ;;  %v785_v48 = vsel %vm402_vm2, %v784_v47, -inf  ;;  %s1170_s17 = sshll.u32 %s323_s16, 4  ;;  %s1824_s17 = int_to_ptr.vmem [resolvable:$true] %s1170_s17 }
 0x255   : > { %v1351_v46 = vpop.f32.mrb[11].mxu1  ;;  %p1490_p0 = scmp.lt.s32.totalorder %s1824_s17, %s1488_s25 }
 0x263   : > { %460 = vrot.lane.b32.xlu0 %v1687_v6, %s1557_s26  ;;  %s1157_s26 = scalar_lea.sflag [#allocation3], %s321_s24 }
 0x267   : > { %795 = vrot.lane.b32.xlu0 %v1687_v6, %s1558_s27  ;;  %s1483_s27 = scalar_lea.vmem %s1824_s17, 64 }
 0x268   : > { %p1484_p11 = scmp.ne.s32.totalorder %s1824_s17, %s1483_s27 }
 0x26a   : > { %p1485_p12 = pnand %p1484_p11, %p1652_p5 }
 0x26c   : > { %p1486_p13 = pneg %p1485_p12 }
 0x276   : > { %786 = vmax.xlane.f32.xlu1 %v785_v48 }
 0x287   : > { %684 = vrot.lane.b32.xlu1 %v1687_v6, %s1559_s28  ;;  %s1489_s28 = scalar_lea.vmem %s1488_s25, 128 }
 0x288   : > { %p1491_p1 = scmp.lt.s32.totalorder %s1489_s28, %s1483_s27 }
 0x28a   : > { %p1492_p2 = por %p1491_p1, %p1490_p0 }
 0x28c   : > { %p1493_p3 = pnand %p1492_p2, %p1486_p13 }
 0x2ce   : > { %v452_v49 = vpop.xlane.xlu1 %451 }
 0x2cf   : > { %v453_v50 = vsub.f32 %v449_v26, %v452_v49 }
 0x2d1   : > { %v454_v51 = vmul.f32 1.442695, %v453_v50 }
 0x2d2   : > { %v565_v52 = vpop.xlane.xlu0 %564  ;;  %v574_v61 = vpop.permute.xlu1 %573 }
 0x2d3   : > { %v566_v53 = vsub.f32 %v562_v32, %v565_v52  ;;  %1463 = vpow2.f32 %v454_v51  ;;  %v579_v2 = vsel %vm465_vm4, %v574_v61, 0 }
 0x2d5   : > { %v567_v54 = vmul.f32 1.442695, %v566_v53 }
 0x2d7   : > { %1465 = vpow2.f32 %v567_v54 }
 0x2da   : > { %v676_v55 = vpop.xlane.xlu0 %675 }
 0x2db   : > { %v677_v56 = vsub.f32 %v673_v38, %v676_v55 }
 0x2dd   : > { %v678_v57 = vmul.f32 1.442695, %v677_v56  ;;  %v1464_v58 = vpop.eup %1463  ;;  %v330_v56 = vunpack.c.l.bf16 %v1681_v3  ;;  %v1454_v3 = vld [vmem:[%s1869_s5 + $0x8] sm:$0xff]  }
 0x2de   : > { %v461_v59 = vpop.permute.xlu0 %460  ;;  %v459_v63 = vpack.c.bf16 %v1464_v58, %v1464_v58  ;;  %v456_v4 = vsel %vm402_vm2, %v1464_v58, 0.0 }
 0x2df   : > { %1467 = vpow2.f32 %v678_v57  ;;  %v467_v60 = vsel %vm465_vm4, %v461_v59, 0 }
 0x2e0   : > { %1317 = vmatpush3.bf16.msra.mxu0 %v467_v60 }
 0x2e1   : > { %v1466_v62 = vpop.eup %1465  ;;  %1328 = vmatprep.subr.bf16.mxu0 %v1547_v1 }
 0x2e2   : > { %v569_v0 = vsel %vm402_vm2, %v1466_v62, 0.0  ;;  %v572_v6 = vpack.c.bf16 %v1466_v62, %v1466_v62  ;;  %v796_v13 = vpop.permute.xlu0 %795 }
 0x2e3   : > { %570 = vadd.xlane.f32.xlu1 %v569_v0  ;;  %1319 = vmatmul.mubr.msk.bf16.vlgmr.msra.gmra.mrb[8].mxu0 %vm402_vm2, %v459_v63  ;;  %v801_v15 = vsel %vm465_vm4, %v796_v13, 0 }
 0x2e4   : > { %1329 = vmatpush3.bf16.msra.mxu0 %v579_v2  ;;  %1330 = vmatprep.mubr.msk.bf16.mxu0 %vm1548_vm0, %v1547_v1  ;;  %v1453_v2 = vld [vmem:[%s1869_s5] sm:$0xff]  }
 0x2e5   : > { %1340 = vmatprep.subr.bf16.mxu0 %v1547_v1 }
 0x2e7   : > { %457 = vadd.xlane.f32.xlu1 %v456_v4  ;;  %v1455_v4 = vld [vmem:[%s1870_s6] sm:$0xff]  }
 0x2e9   : > { %v1468_v5 = vpop.eup %1467 }
 0x2ea   : > { %v680_v7 = vsel %vm402_vm2, %v1468_v5, 0.0  ;;  %v683_v14 = vpack.c.bf16 %v1468_v5, %v1468_v5  ;;  %v1456_v5 = vld [vmem:[%s1870_s6 + $0x8] sm:$0xff]  }
 0x2eb   : > { %681 = vadd.xlane.f32.xlu0 %v680_v7  ;;  %1331 = vmatmul.mubr.msk.bf16.vlgmr.msra.gmra.mrb[12].mxu0 %vm402_vm2, %v572_v6  ;;  %v1457_v6 = vld [vmem:[%s1870_s6 + $0x10] sm:$0xff]   ;;  %v1458_v7 = vld [vmem:[%s1870_s6 + $0x18] sm:$0xff]  }
 0x2ec   : > { %1342 = vmatprep.mubr.msk.bf16.mxu0 %vm1548_vm0, %v1547_v1 }
 0x303   : > { %v787_v8 = vpop.xlane.xlu1 %786 }
 0x304   : > { %v788_v9 = vsub.f32 %v784_v47, %v787_v8  ;;  %v1459_v8 = vld [vmem:[%s1870_s6 + $0x20] sm:$0xff]  }
 0x306   : > { %v789_v10 = vmul.f32 1.442695, %v788_v9  ;;  %v1460_v9 = vld [vmem:[%s1870_s6 + $0x28] sm:$0xff]  }
 0x307   : > { %v685_v11 = vpop.permute.xlu1 %684 }
 0x308   : > { %1469 = vpow2.f32 %v789_v10  ;;  %v690_v12 = vsel %vm465_vm4, %v685_v11, 0  ;;  %v1461_v10 = vld [vmem:[%s1870_s6 + $0x30] sm:$0xff]  }
 0x309   : > { %1341 = vmatpush3.bf16.msra.mxu0 %v690_v12 }
 0x30a   : > { %1352 = vmatprep.subr.bf16.mxu0 %v1547_v1 }
 0x30c   : > { %1343 = vmatmul.mubr.msk.bf16.vlgmr.msra.gmra.mrb[16].mxu0 %vm402_vm2, %v683_v14 }
 0x30d   : > { %1353 = vmatpush3.bf16.msra.mxu0 %v801_v15  ;;  %1354 = vmatprep.mubr.msk.bf16.mxu0 %vm1548_vm0, %v1547_v1 }
 0x30e   : > { %1366 = vmatprep.subr.bf16.mxu0 %v1547_v1 }
 0x312   : > { %v1470_v16 = vpop.eup %1469 }
 0x313   : > { %v791_v17 = vsel %vm402_vm2, %v1470_v16, 0.0  ;;  %v794_v18 = vpack.c.bf16 %v1470_v16, %v1470_v16 }
 0x314   : > { %792 = vadd.xlane.f32.xlu0 %v791_v17 }
 0x315   : > { %1355 = vmatmul.mubr.msk.bf16.vlgmr.msra.gmra.mrb[20].mxu0 %vm402_vm2, %v794_v18 }
 0x316   : > { %1370 = vmatprep.mubr.msk.bf16.mxu0 %vm1548_vm0, %v1547_v1  ;;  %1367 = vmatpush3.bf16.msra.mxu0 %v1453_v2 }
 0x317   : > { %1368 = vmatprep.subr.bf16.mxu0 %v1547_v1 }
 0x31a   : > { %1369 = vmatpush3.bf16.msra.mxu0 %v1454_v3 }
 0x370   : > { %v571_v19 = vpop.xlane.xlu1 %570 }
 0x371   : > { %1471 = vrcp.f32 %v571_v19 }
 0x374   : > { %v458_v46 = vpop.xlane.xlu1 %457 }
 0x378   : > { %v682_v30 = vpop.xlane.xlu0 %681 }
 0x379   : > { %1473 = vrcp.f32 %v682_v30 }
 0x37b   : > { %v1472_v24 = vpop.eup %1471 }
 0x383   : > { %v1474_v34 = vpop.eup %1473 }
 0x3a1   : > { %v793_v32 = vpop.xlane.xlu0 %792 }
 0x3a2   : > { %1475 = vrcp.f32 %v793_v32 }
 0x3a3   : > { %1477 = vrcp.f32 %v458_v46 }
 0x3ac   : > { %v1476_v40 = vpop.eup %1475 }
 0x3ad   : > { %v1478_v47 = vpop.eup %1477 }
 0x3b6   : > { %v503_v20 = vpop.f32.mrb[8].mxu0 }
 0x3b7   : > { %v1320_v21 = vpop.f32.mrb[9].mxu0  ;;  %v510_v50 = vmul.f32 %v1478_v47, %v503_v20  ;;  %v1249_v20 = vld [vmem:[%s1867_s3] ss:$0 sm:$0xff] }
 0x3b8   : > { %v506_v22 = vpop.f32.mrb[10].mxu0 }
 0x3b9   : > { %v1321_v23 = vpop.f32.mrb[11].mxu0  ;;  %v1250_v22 = vld [vmem:[%s1868_s4] ss:$0 sm:$0xff] }
 0x3be   : > { %v615_v25 = vpop.f32.mrb[12].mxu0 }
 0x3bf   : > { %v622_v26 = vmul.f32 %v1472_v24, %v615_v25  ;;  %v1332_v27 = vpop.f32.mrb[13].mxu0  ;;  %v1462_v25 = vld [vmem:[%s1870_s6 + $0x38] sm:$0xff]  }
 0x3c0   : > { %v618_v28 = vpop.f32.mrb[14].mxu0 }
 0x3c1   : > { %846 = vrot.lane.b32.xlu0 %v622_v26, %s1560_s29  ;;  %v1333_v29 = vpop.f32.mrb[15].mxu0 }
 0x3df   : > { %v726_v35 = vpop.f32.mrb[16].mxu0 }
 0x3e0   : > { %v733_v36 = vmul.f32 %v1474_v34, %v726_v35  ;;  %v1344_v37 = vpop.f32.mrb[17].mxu0 }
 0x3e1   : > { %v729_v38 = vpop.f32.mrb[18].mxu0 }
 0x3e2   : > { %850 = vrot.lane.b32.xlu1 %v733_v36, %s1561_s22  ;;  %v1345_v39 = vpop.f32.mrb[19].mxu0 }
 0x3e8   : > { %v837_v41 = vpop.f32.mrb[20].mxu0 }
 0x3e9   : > { %v844_v42 = vmul.f32 %v1476_v40, %v837_v41  ;;  %v1356_v43 = vpop.f32.mrb[21].mxu0 }
 0x3ea   : > { %v840_v44 = vpop.f32.mrb[22].mxu0 }
 0x3eb   : > { %854 = vrot.lane.b32.xlu1 %v844_v42, %s1562_s23  ;;  %v1357_v45 = vpop.f32.mrb[23].mxu0  ;;  %s1822_s23 = scalar_lea.hbm %s1873_s9, %s1265_s14 }
 0x433   : > { %v847_v48 = vpop.permute.xlu0 %846 }
 0x434   : > { %v857_v51 = vsel %vm402_vm2, %v510_v50, %v847_v48 }
 0x454   : > { %v851_v49 = vpop.permute.xlu1 %850 }
 0x455   : > { %v859_v52 = vsel %vm858_vm5, %v857_v51, %v851_v49  ;;  %v1262_v49 = vld [vmem:[%s1871_s7] ss:$0 sm:$0xff] }
 0x456   : > { %v1263_v51 = vld [vmem:[%s1872_s8] ss:$0 sm:$0xff] }
 0x45d   : > { %v855_v53 = vpop.permute.xlu1 %854 }
 0x45e   : > { %v861_v54 = vsel %vm860_vm6, %v859_v52, %v855_v53 }
 0x45f   : > { %v862_v55 = vpack.c.bf16 %v861_v54, %v861_v54 }
 0x461   : > { %1363 = vmatmul.mubr.msk.bf16.vlgmr.msra.gmra.mrb[12].mxu1 %vm347_vm1, %v862_v55 }
 0x462   : > { %1390 = vmatprep.mubr.msk.bf16.mxu1 %vm1548_vm0, %v1547_v1  ;;  %1375 = vmatpush3.bf16.msra.mxu1 %v1455_v4 }
 0x463   : > { %1376 = vmatprep.subr.bf16.mxu1 %v1547_v1 }
 0x466   : > { %1377 = vmatpush3.bf16.msra.mxu1 %v1456_v5 }
 0x467   : > { %1378 = vmatprep.subr.bf16.mxu1 %v1547_v1 }
 0x46a   : > { %1379 = vmatpush3.bf16.msra.mxu1 %v1457_v6 }
 0x46b   : > { %1380 = vmatprep.subr.bf16.mxu1 %v1547_v1 }
 0x46e   : > { %1381 = vmatpush3.bf16.msra.mxu1 %v1458_v7 }
 0x46f   : > { %1382 = vmatprep.subr.bf16.mxu1 %v1547_v1 }
 0x472   : > { %1383 = vmatpush3.bf16.msra.mxu1 %v1459_v8 }
 0x473   : > { %1384 = vmatprep.subr.bf16.mxu1 %v1547_v1 }
 0x476   : > { %1385 = vmatpush3.bf16.msra.mxu1 %v1460_v9 }
 0x477   : > { %1386 = vmatprep.subr.bf16.mxu1 %v1547_v1 }
 0x47a   : > { %1387 = vmatpush3.bf16.msra.mxu1 %v1461_v10 }
 0x47b   : > { %1388 = vmatprep.subr.bf16.mxu1 %v1547_v1 }
 0x47e   : > { %1389 = vmatpush3.bf16.msra.mxu1 %v1462_v25 }
 0x534   : > { %v916_v57 = vpop.f32.mrb[12].mxu1 }
 0x535   : > { %v922_v58 = vadd.f32 %v916_v57, %v330_v56  ;;  %v1364_v59 = vpop.f32.mrb[13].mxu1 }
 0x536   : > { %v919_v60 = vpop.f32.mrb[14].mxu1 }
 0x537   : > { %v1365_v61 = vpop.f32.mrb[15].mxu1  ;;  %v923_v62 = vsel %vm347_vm1, %v922_v58, 0.0  ;;  %v928_v63 = vmul.f32 %v922_v58, %v922_v58 }
 0x538   : > { %924 = vadd.xlane.f32.xlu0 %v923_v62 }
 0x539   : > { %v929_v0 = vsel %vm347_vm1, %v928_v63, 0.0 }
 0x53a   : > { %930 = vadd.xlane.f32.xlu1 %v929_v0 }
 0x5c5   : > { %v925_v11 = vpop.xlane.xlu0 %924 }
 0x5c6   : > { %v927_v12 = vmul.f32 0.03125, %v925_v11 }
 0x5c7   : > { %v931_v13 = vpop.xlane.xlu1 %930 }
 0x5c8   : > { %v933_v14 = vmul.f32 %v927_v12, %v927_v12  ;;  %v932_v15 = vmul.f32 0.03125, %v931_v13  ;;  %v935_v18 = vsub.f32 %v922_v58, %v927_v12 }
 0x5ca   : > { %v934_v16 = vsub.f32 %v932_v15, %v933_v14 }
 0x5cc   : > { %v936_v17 = vadd.f32 1e-05, %v934_v16 }
 0x5ce   : > { %1479 = vrsqrt.f32 %v936_v17 }
 0x5d8   : > { %v1480_v19 = vpop.eup %1479 }
 0x5d9   : > { %v938_v21 = vmul.f32 %v1480_v19, %v935_v18 }
 0x5db   : > { %v946_v1 = vmul.f32 %v1249_v20, %v938_v21 }
 0x5dd   : > { %v954_v23 = vadd.f32 %v1250_v22, %v946_v1 }
 0x5df   : > { %v955_v24 = vpack.c.bf16 %v954_v23, %v954_v23 }
 0x5e1   : > { %1371 = vmatmul.mubr.msk.bf16.vlgmr.msra.gmra.mrb[24].mxu0 %vm347_vm1, %v955_v24 }
 0x6b4   : > { %v1009_v26 = vpop.f32.mrb[24].mxu0 }
 0x6b5   : > { %v1015_v27 = vmax.f32 %v1009_v26, 0.0  ;;  %v1372_v28 = vpop.f32.mrb[25].mxu0 }
 0x6b6   : > { %v1012_v29 = vpop.f32.mrb[26].mxu0 }
 0x6b7   : > { %v1016_v30 = vpack.c.bf16 %v1015_v27, %v1015_v27  ;;  %v1373_v31 = vpop.f32.mrb[27].mxu0 }
 0x6b9   : > { %1391 = vmatmul.mubr.bf16.vlgmr.msra.gmra.mrb[16].mxu1 %v1016_v30 }
 0x78c   : > { %v1115_v32 = vpop.f32.mrb[16].mxu1 }
 0x78d   : > { %v1121_v33 = vadd.f32 %v1115_v32, %v954_v23  ;;  %v1392_v34 = vpop.f32.mrb[17].mxu1 }
 0x78e   : > { %v1118_v35 = vpop.f32.mrb[18].mxu1 }
 0x78f   : > { %v1393_v36 = vpop.f32.mrb[19].mxu1  ;;  %v1122_v37 = vsel %vm347_vm1, %v1121_v33, 0.0  ;;  %v1126_v38 = vmul.f32 %v1121_v33, %v1121_v33 }
 0x790   : > { %1123 = vadd.xlane.f32.xlu0 %v1122_v37 }
 0x791   : > { %v1127_v39 = vsel %vm347_vm1, %v1126_v38, 0.0 }
 0x794   : > { %1128 = vadd.xlane.f32.xlu0 %v1127_v39 }
 0x81d   : > { %v1124_v40 = vpop.xlane.xlu0 %1123 }
 0x81e   : > { %v1125_v41 = vmul.f32 0.03125, %v1124_v40 }
 0x820   : > { %v1131_v43 = vmul.f32 %v1125_v41, %v1125_v41  ;;  %v1133_v47 = vsub.f32 %v1121_v33, %v1125_v41 }
 0x821   : > { %v1129_v42 = vpop.xlane.xlu0 %1128 }
 0x822   : > { %v1130_v44 = vmul.f32 0.03125, %v1129_v42 }
 0x824   : > { %v1132_v45 = vsub.f32 %v1130_v44, %v1131_v43 }
 0x826   : > { %v1134_v46 = vadd.f32 1e-05, %v1132_v45 }
 0x828   : > { %1481 = vrsqrt.f32 %v1134_v46 }
 0x832   : > { %v1482_v48 = vpop.eup %1481 }
 0x833   : > { %v1136_v50 = vmul.f32 %v1482_v48, %v1133_v47 }
 0x835   : > { %v1144_v52 = vmul.f32 %v1262_v49, %v1136_v50 }
 0x837   : > { %v1152_v53 = vadd.f32 %v1263_v51, %v1144_v52 }
 0x839   : > { %v1153_v54 = vpack.c.bf16 %v1152_v53, %v1152_v53 }
 0x83b   : > { %1155 = vst.msk [vmem:[%s323_s16] sm:$0xf] %vm1154_vm7, %v1153_v54 }
 0x83c   : > { %1496 = shalt.err (!%p1493_p3)
}
 0x83d   : > { %s1497_s24 = scalar_lea.hbm %s1822_s23, 64  ;;  %s1501_s16 = scalar_lea.hbm %s1873_s9, 128 }
 0x83e   : > { %p1498_p4 = scmp.ne.s32.totalorder %s1822_s23, %s1497_s24  ;;  %p1502_p9 = scmp.lt.u32.totalorder %s1822_s23, %s1873_s9 }
 0x83f   : > { %p1503_p10 = scmp.lt.u32.totalorder %s1501_s16, %s1497_s24  ;;  %p1505_p12 = scmp.lt.u32.totalorder %s1497_s24, %s1822_s23 }
 0x840   : > { %p1499_p7 = pnand %p1498_p4, %p1652_p5 }
 0x841   : > { %p1504_p11 = por %p1503_p10, %p1502_p9 }
 0x842   : > { %p1500_p8 = pneg %p1499_p7 }
 0x843   : > { %p1506_p13 = por %p1505_p12, %p1504_p11 }
 0x845   : > { %p1507_p0 = pnand %p1506_p13, %p1500_p8 }
 0x847   : > { %1510 = shalt.err (!%p1507_p0)
}
 0x848   : > { %1394 = dma.vmem_to_hbm [thread:$0]  (%p1652_p5), %s1824_s17, 64, %s1822_s23, %s1157_s26  }
 0x849 PF: > { %p1400_p1 = scmp.ge.s32.totalorder %s1545_s12, 2  ;;  %s1182_s27 = sand.u32 1, %s1533_s30  }
 0x84a   : > { %s1183_s13 = scalar_lea.sflag [#allocation3], %s1182_s27 }
 0x84b   : > { %p1397_p2 = pnand %p1400_p1, %p1656_p6 }
 0x84d   : > { %1528 = dma.done.wait (!%p1397_p2), %s1183_s13, 64  }
 0x84e   : > { %1530 = vsyncadd (!%p1397_p2), %s1183_s13, 4294967232  ;;  %p19_p3 = scmp.ge.s32.totalorder %s1639_s15, 4   ;;  %s1876_s30 = smov %s1537_s10 }
 0x84f   : > { %s1877_s10 = smov %s1541_s11  ;;  %s1878_s11 = smov %s1650_s18 }
 0x850   : > { %s1879_s12 = smov %s1639_s15  ;;  %21 = sbr.rel (!%p19_p3) target bundleno = 3 (0x3), region = 91 }
 0x857   :  { %1188 = vsyncpa [#allocation3], 1 }
 0x858   :  { %1190 = vsyncpa [#allocation3 + $0x1], 1 }

</bundles_post_ra>
